<compile_context>
chip_gen: v5e
topology: v5e:2x2
jax: 0.10.0
libtpu: 0.0.40
codegen_flags: <defaults>
</compile_context>

<pallas_src>
import math

import jax
import jax.numpy as jnp
from jax.experimental import pallas as pl
from jax.experimental.pallas import tpu as pltpu

# Layer sizes of the Classifier MLP.
LAYER_DIMS = [8, 6, 5, 4, 2, 1]

# Static offsets of each layer's weights / biases inside the packed SMEM buffer.
# Packing order per layer: W (out, in) row-major, then b (out,).
_W_OFF, _B_OFF = [], []
_off = 0
for _i in range(len(LAYER_DIMS) - 1):
    _fi, _fo = LAYER_DIMS[_i], LAYER_DIMS[_i + 1]
    _W_OFF.append(_off)
    _off += _fo * _fi
    _B_OFF.append(_off)
    _off += _fo
N_PARAMS = _off  # 126 floats total


def _mlp_kernel(x_ref, params_ref, o_ref):
    """Full MLP forward for one batch tile.

    x_ref:      [8, TILE_G, 128]  VMEM  (feature-major, batch on sublane/lane)
    params_ref: [N_PARAMS]        SMEM  (all weights + biases, packed)
    o_ref:      [1, TILE_G, 128]  VMEM
    """
    n_layers = len(LAYER_DIMS) - 1
    # Per-feature rows, each a dense [TILE_G, 128] f32 tile.
    h = [x_ref[k] for k in range(LAYER_DIMS[0])]

    for li in range(n_layers):
        fi, fo = LAYER_DIMS[li], LAYER_DIMS[li + 1]
        w_off, b_off = _W_OFF[li], _B_OFF[li]
        last = li == n_layers - 1
        new_h = []
        for j in range(fo):
            # out[j] = b[j] + sum_k W[j, k] * h[k]   (VPU scalar-broadcast FMAs)
            acc = h[0] * params_ref[w_off + j * fi]
            for k in range(1, fi):
                acc = acc + h[k] * params_ref[w_off + j * fi + k]
            acc = acc + params_ref[b_off + j]
            if last:
                # Sigmoid (exp goes to the EUP; exact divide keeps f32 accuracy).
                acc = 1.0 / (1.0 + jnp.exp(-acc))
            else:
                acc = jnp.maximum(acc, 0.0)  # ReLU
            new_h.append(acc)
        h = new_h

    # Final layer has a single output feature -> one dense [TILE_G, 128] store.
    o_ref[0] = h[0].astype(o_ref.dtype)


def pack_params(params):
    """Flatten [(W(out,in), b(out,))] into one f32 vector matching _W_OFF/_B_OFF."""
    flat = []
    for w, b in params:
        flat.append(jnp.asarray(w, jnp.float32).reshape(-1))
        flat.append(jnp.asarray(b, jnp.float32).reshape(-1))
    packed = jnp.concatenate(flat)
    assert packed.shape == (N_PARAMS,)
    return packed


def classifier_forward(x, params, *, tile_g=16):
    """x: [B, 8]; params: list of (W, b) in torch layout W:(out,in), b:(out,)."""
    batch = x.shape[0]
    assert x.shape[1] == LAYER_DIMS[0]

    # Minimum number of 128-lane groups needed for this batch.
    min_groups = max(1, -(-batch // 128))

    if min_groups <= tile_g:
        # Whole batch fits in one tile: block sublane dim == full array dim,
        # so no 8-sublane divisibility requirement and no wasted compute.
        tile_g = min_groups
        n_groups = min_groups
    else:
        # Multi-tile: keep the block sublane dim a multiple of 8 for layout.
        tile_g = max(8, (tile_g // 8) * 8)
        n_groups = ((min_groups + tile_g - 1) // tile_g) * tile_g

    b_pad = n_groups * 128

    # [B, 8] -> [8, B_pad] -> [8, G, 128]: batch on sublane-groups x lanes.
    x_t = jnp.transpose(x.astype(jnp.float32))          # [8, B]
    x_t = jnp.pad(x_t, ((0, 0), (0, b_pad - batch)))    # [8, B_pad]
    x_t = x_t.reshape(LAYER_DIMS[0], n_groups, 128)     # [8, G, 128]

    packed = pack_params(params)

    out = pl.pallas_call(
        _mlp_kernel,
        out_shape=jax.ShapeDtypeStruct((1, n_groups, 128), jnp.float32),
        grid_spec=pltpu.PrefetchScalarGridSpec(
            num_scalar_prefetch=0,
            grid=(n_groups // tile_g,),
            in_specs=[
                # Batch tile of x (double-buffered by the Pallas pipeline).
                pl.BlockSpec((LAYER_DIMS[0], tile_g, 128), lambda i: (0, i, 0)),
                # All parameters coalesced into a single tiny SMEM buffer,
                # resident across every grid step.
                pl.BlockSpec(memory_space=pltpu.MemorySpace.SMEM),
            ],
            out_specs=pl.BlockSpec((1, tile_g, 128), lambda i: (0, i, 0)),
        ),
        compiler_params=pltpu.CompilerParams(
            dimension_semantics=("parallel",),  # megacore split on v7x
        ),
    )(x_t, packed)

    # [1, G, 128] -> [B, 1]
    return out.reshape(1, b_pad)[:, :batch].T


def init_params(key):
    """Deterministic init mimicking torch.nn.Linear default (U[-1/sqrt(in), 1/sqrt(in)]).

    Weights are stored in torch layout: W (out_features, in_features), b (out_features,).
    """
    params = []
    for i in range(len(LAYER_DIMS) - 1):
        fan_in, fan_out = LAYER_DIMS[i], LAYER_DIMS[i + 1]
        key, kw, kb = jax.random.split(key, 3)
        bound = 1.0 / math.sqrt(fan_in)
        w = jax.random.uniform(kw, (fan_out, fan_in), jnp.float32, -bound, bound)
        b = jax.random.uniform(kb, (fan_out,), jnp.float32, -bound, bound)
        params.append((w, b))
    return params


def reference_forward(x, params):
    """Pure-JAX reference for correctness checking."""
    h = x
    for i, (w, b) in enumerate(params):
        h = h @ w.T + b
        if i < len(params) - 1:
            h = jnp.maximum(h, 0.0)
        else:
            h = 1.0 / (1.0 + jnp.exp(-h))
    return h


if __name__ == "__main__":
    key = jax.random.PRNGKey(0)
    key, k_x, k_p = jax.random.split(key, 3)

    batch = 8
    x = jax.random.normal(k_x, (batch, LAYER_DIMS[0]), jnp.float32)
    params = init_params(k_p)

    out = classifier_forward(x, params)
    out = jax.block_until_ready(out)

    ref = reference_forward(x, params)
    assert out.shape == (batch, 1), out.shape
    assert jnp.allclose(out, ref, atol=1e-5, rtol=1e-5), (out, ref)

    print("KERNEL_OK")
</pallas_src>

<mosaic_0001>
module attributes {stable_mosaic.version = 11 : i64} {
  func.func @_mlp_kernel(%arg0: i32, %arg1: memref<8x1x128xf32, #tpu.memory_space<vmem>>, %arg2: memref<126xf32, #tpu.memory_space<smem>>, %arg3: memref<1x1x128xf32, #tpu.memory_space<vmem>>) attributes {dimension_semantics = [#tpu.dimension_semantics<parallel>], iteration_bounds = array<i64: 1>, scalar_prefetch = 0 : i64, scratch_operands = 0 : i64, tpu.core_type = #tpu.core_type<tc>, window_params = [{transform_indices = @transform_0, window_bounds = array<i64: 8, 1, 128>}, {transform_indices = @transform_1, window_bounds = array<i64: 126>}, {transform_indices = @transform_2, window_bounds = array<i64: 1, 1, 128>}]} {
    %c0 = arith.constant 0 : index
    %c0_0 = arith.constant 0 : index
    %c0_1 = arith.constant 0 : index
    %0 = vector.load %arg1[%c0, %c0_0, %c0_1] : memref<8x1x128xf32, #tpu.memory_space<vmem>>, vector<1x1x128xf32>
    %1 = vector.shape_cast %0 : vector<1x1x128xf32> to vector<1x128xf32>
    %c1 = arith.constant 1 : index
    %c0_2 = arith.constant 0 : index
    %c0_3 = arith.constant 0 : index
    %2 = vector.load %arg1[%c1, %c0_2, %c0_3] : memref<8x1x128xf32, #tpu.memory_space<vmem>>, vector<1x1x128xf32>
    %3 = vector.shape_cast %2 : vector<1x1x128xf32> to vector<1x128xf32>
    %c2 = arith.constant 2 : index
    %c0_4 = arith.constant 0 : index
    %c0_5 = arith.constant 0 : index
    %4 = vector.load %arg1[%c2, %c0_4, %c0_5] : memref<8x1x128xf32, #tpu.memory_space<vmem>>, vector<1x1x128xf32>
    %5 = vector.shape_cast %4 : vector<1x1x128xf32> to vector<1x128xf32>
    %c3 = arith.constant 3 : index
    %c0_6 = arith.constant 0 : index
    %c0_7 = arith.constant 0 : index
    %6 = vector.load %arg1[%c3, %c0_6, %c0_7] : memref<8x1x128xf32, #tpu.memory_space<vmem>>, vector<1x1x128xf32>
    %7 = vector.shape_cast %6 : vector<1x1x128xf32> to vector<1x128xf32>
    %c4 = arith.constant 4 : index
    %c0_8 = arith.constant 0 : index
    %c0_9 = arith.constant 0 : index
    %8 = vector.load %arg1[%c4, %c0_8, %c0_9] : memref<8x1x128xf32, #tpu.memory_space<vmem>>, vector<1x1x128xf32>
    %9 = vector.shape_cast %8 : vector<1x1x128xf32> to vector<1x128xf32>
    %c5 = arith.constant 5 : index
    %c0_10 = arith.constant 0 : index
    %c0_11 = arith.constant 0 : index
    %10 = vector.load %arg1[%c5, %c0_10, %c0_11] : memref<8x1x128xf32, #tpu.memory_space<vmem>>, vector<1x1x128xf32>
    %11 = vector.shape_cast %10 : vector<1x1x128xf32> to vector<1x128xf32>
    %c6 = arith.constant 6 : index
    %c0_12 = arith.constant 0 : index
    %c0_13 = arith.constant 0 : index
    %12 = vector.load %arg1[%c6, %c0_12, %c0_13] : memref<8x1x128xf32, #tpu.memory_space<vmem>>, vector<1x1x128xf32>
    %13 = vector.shape_cast %12 : vector<1x1x128xf32> to vector<1x128xf32>
    %c7 = arith.constant 7 : index
    %c0_14 = arith.constant 0 : index
    %c0_15 = arith.constant 0 : index
    %14 = vector.load %arg1[%c7, %c0_14, %c0_15] : memref<8x1x128xf32, #tpu.memory_space<vmem>>, vector<1x1x128xf32>
    %15 = vector.shape_cast %14 : vector<1x1x128xf32> to vector<1x128xf32>
    %c0_16 = arith.constant 0 : index
    %16 = memref.load %arg2[%c0_16] : memref<126xf32, #tpu.memory_space<smem>>
    %17 = vector.broadcast %16 : f32 to vector<1x128xf32>
    %18 = arith.mulf %1, %17 : vector<1x128xf32>
    %c1_17 = arith.constant 1 : index
    %19 = memref.load %arg2[%c1_17] : memref<126xf32, #tpu.memory_space<smem>>
    %20 = vector.broadcast %19 : f32 to vector<1x128xf32>
    %21 = arith.mulf %3, %20 : vector<1x128xf32>
    %22 = arith.addf %18, %21 : vector<1x128xf32>
    %c2_18 = arith.constant 2 : index
    %23 = memref.load %arg2[%c2_18] : memref<126xf32, #tpu.memory_space<smem>>
    %24 = vector.broadcast %23 : f32 to vector<1x128xf32>
    %25 = arith.mulf %5, %24 : vector<1x128xf32>
    %26 = arith.addf %22, %25 : vector<1x128xf32>
    %c3_19 = arith.constant 3 : index
    %27 = memref.load %arg2[%c3_19] : memref<126xf32, #tpu.memory_space<smem>>
    %28 = vector.broadcast %27 : f32 to vector<1x128xf32>
    %29 = arith.mulf %7, %28 : vector<1x128xf32>
    %30 = arith.addf %26, %29 : vector<1x128xf32>
    %c4_20 = arith.constant 4 : index
    %31 = memref.load %arg2[%c4_20] : memref<126xf32, #tpu.memory_space<smem>>
    %32 = vector.broadcast %31 : f32 to vector<1x128xf32>
    %33 = arith.mulf %9, %32 : vector<1x128xf32>
    %34 = arith.addf %30, %33 : vector<1x128xf32>
    %c5_21 = arith.constant 5 : index
    %35 = memref.load %arg2[%c5_21] : memref<126xf32, #tpu.memory_space<smem>>
    %36 = vector.broadcast %35 : f32 to vector<1x128xf32>
    %37 = arith.mulf %11, %36 : vector<1x128xf32>
    %38 = arith.addf %34, %37 : vector<1x128xf32>
    %c6_22 = arith.constant 6 : index
    %39 = memref.load %arg2[%c6_22] : memref<126xf32, #tpu.memory_space<smem>>
    %40 = vector.broadcast %39 : f32 to vector<1x128xf32>
    %41 = arith.mulf %13, %40 : vector<1x128xf32>
    %42 = arith.addf %38, %41 : vector<1x128xf32>
    %c7_23 = arith.constant 7 : index
    %43 = memref.load %arg2[%c7_23] : memref<126xf32, #tpu.memory_space<smem>>
    %44 = vector.broadcast %43 : f32 to vector<1x128xf32>
    %45 = arith.mulf %15, %44 : vector<1x128xf32>
    %46 = arith.addf %42, %45 : vector<1x128xf32>
    %c48 = arith.constant 48 : index
    %47 = memref.load %arg2[%c48] : memref<126xf32, #tpu.memory_space<smem>>
    %48 = vector.broadcast %47 : f32 to vector<1x128xf32>
    %49 = arith.addf %46, %48 : vector<1x128xf32>
    %cst = arith.constant 0.000000e+00 : f32
    %50 = vector.broadcast %cst : f32 to vector<1x128xf32>
    %51 = arith.maximumf %49, %50 : vector<1x128xf32>
    %c8 = arith.constant 8 : index
    %52 = memref.load %arg2[%c8] : memref<126xf32, #tpu.memory_space<smem>>
    %53 = vector.broadcast %52 : f32 to vector<1x128xf32>
    %54 = arith.mulf %1, %53 : vector<1x128xf32>
    %c9 = arith.constant 9 : index
    %55 = memref.load %arg2[%c9] : memref<126xf32, #tpu.memory_space<smem>>
    %56 = vector.broadcast %55 : f32 to vector<1x128xf32>
    %57 = arith.mulf %3, %56 : vector<1x128xf32>
    %58 = arith.addf %54, %57 : vector<1x128xf32>
    %c10 = arith.constant 10 : index
    %59 = memref.load %arg2[%c10] : memref<126xf32, #tpu.memory_space<smem>>
    %60 = vector.broadcast %59 : f32 to vector<1x128xf32>
    %61 = arith.mulf %5, %60 : vector<1x128xf32>
    %62 = arith.addf %58, %61 : vector<1x128xf32>
    %c11 = arith.constant 11 : index
    %63 = memref.load %arg2[%c11] : memref<126xf32, #tpu.memory_space<smem>>
    %64 = vector.broadcast %63 : f32 to vector<1x128xf32>
    %65 = arith.mulf %7, %64 : vector<1x128xf32>
    %66 = arith.addf %62, %65 : vector<1x128xf32>
    %c12 = arith.constant 12 : index
    %67 = memref.load %arg2[%c12] : memref<126xf32, #tpu.memory_space<smem>>
    %68 = vector.broadcast %67 : f32 to vector<1x128xf32>
    %69 = arith.mulf %9, %68 : vector<1x128xf32>
    %70 = arith.addf %66, %69 : vector<1x128xf32>
    %c13 = arith.constant 13 : index
    %71 = memref.load %arg2[%c13] : memref<126xf32, #tpu.memory_space<smem>>
    %72 = vector.broadcast %71 : f32 to vector<1x128xf32>
    %73 = arith.mulf %11, %72 : vector<1x128xf32>
    %74 = arith.addf %70, %73 : vector<1x128xf32>
    %c14 = arith.constant 14 : index
    %75 = memref.load %arg2[%c14] : memref<126xf32, #tpu.memory_space<smem>>
    %76 = vector.broadcast %75 : f32 to vector<1x128xf32>
    %77 = arith.mulf %13, %76 : vector<1x128xf32>
    %78 = arith.addf %74, %77 : vector<1x128xf32>
    %c15 = arith.constant 15 : index
    %79 = memref.load %arg2[%c15] : memref<126xf32, #tpu.memory_space<smem>>
    %80 = vector.broadcast %79 : f32 to vector<1x128xf32>
    %81 = arith.mulf %15, %80 : vector<1x128xf32>
    %82 = arith.addf %78, %81 : vector<1x128xf32>
    %c49 = arith.constant 49 : index
    %83 = memref.load %arg2[%c49] : memref<126xf32, #tpu.memory_space<smem>>
    %84 = vector.broadcast %83 : f32 to vector<1x128xf32>
    %85 = arith.addf %82, %84 : vector<1x128xf32>
    %cst_24 = arith.constant 0.000000e+00 : f32
    %86 = vector.broadcast %cst_24 : f32 to vector<1x128xf32>
    %87 = arith.maximumf %85, %86 : vector<1x128xf32>
    %c16 = arith.constant 16 : index
    %88 = memref.load %arg2[%c16] : memref<126xf32, #tpu.memory_space<smem>>
    %89 = vector.broadcast %88 : f32 to vector<1x128xf32>
    %90 = arith.mulf %1, %89 : vector<1x128xf32>
    %c17 = arith.constant 17 : index
    %91 = memref.load %arg2[%c17] : memref<126xf32, #tpu.memory_space<smem>>
    %92 = vector.broadcast %91 : f32 to vector<1x128xf32>
    %93 = arith.mulf %3, %92 : vector<1x128xf32>
    %94 = arith.addf %90, %93 : vector<1x128xf32>
    %c18 = arith.constant 18 : index
    %95 = memref.load %arg2[%c18] : memref<126xf32, #tpu.memory_space<smem>>
    %96 = vector.broadcast %95 : f32 to vector<1x128xf32>
    %97 = arith.mulf %5, %96 : vector<1x128xf32>
    %98 = arith.addf %94, %97 : vector<1x128xf32>
    %c19 = arith.constant 19 : index
    %99 = memref.load %arg2[%c19] : memref<126xf32, #tpu.memory_space<smem>>
    %100 = vector.broadcast %99 : f32 to vector<1x128xf32>
    %101 = arith.mulf %7, %100 : vector<1x128xf32>
    %102 = arith.addf %98, %101 : vector<1x128xf32>
    %c20 = arith.constant 20 : index
    %103 = memref.load %arg2[%c20] : memref<126xf32, #tpu.memory_space<smem>>
    %104 = vector.broadcast %103 : f32 to vector<1x128xf32>
    %105 = arith.mulf %9, %104 : vector<1x128xf32>
    %106 = arith.addf %102, %105 : vector<1x128xf32>
    %c21 = arith.constant 21 : index
    %107 = memref.load %arg2[%c21] : memref<126xf32, #tpu.memory_space<smem>>
    %108 = vector.broadcast %107 : f32 to vector<1x128xf32>
    %109 = arith.mulf %11, %108 : vector<1x128xf32>
    %110 = arith.addf %106, %109 : vector<1x128xf32>
    %c22 = arith.constant 22 : index
    %111 = memref.load %arg2[%c22] : memref<126xf32, #tpu.memory_space<smem>>
    %112 = vector.broadcast %111 : f32 to vector<1x128xf32>
    %113 = arith.mulf %13, %112 : vector<1x128xf32>
    %114 = arith.addf %110, %113 : vector<1x128xf32>
    %c23 = arith.constant 23 : index
    %115 = memref.load %arg2[%c23] : memref<126xf32, #tpu.memory_space<smem>>
    %116 = vector.broadcast %115 : f32 to vector<1x128xf32>
    %117 = arith.mulf %15, %116 : vector<1x128xf32>
    %118 = arith.addf %114, %117 : vector<1x128xf32>
    %c50 = arith.constant 50 : index
    %119 = memref.load %arg2[%c50] : memref<126xf32, #tpu.memory_space<smem>>
    %120 = vector.broadcast %119 : f32 to vector<1x128xf32>
    %121 = arith.addf %118, %120 : vector<1x128xf32>
    %cst_25 = arith.constant 0.000000e+00 : f32
    %122 = vector.broadcast %cst_25 : f32 to vector<1x128xf32>
    %123 = arith.maximumf %121, %122 : vector<1x128xf32>
    %c24 = arith.constant 24 : index
    %124 = memref.load %arg2[%c24] : memref<126xf32, #tpu.memory_space<smem>>
    %125 = vector.broadcast %124 : f32 to vector<1x128xf32>
    %126 = arith.mulf %1, %125 : vector<1x128xf32>
    %c25 = arith.constant 25 : index
    %127 = memref.load %arg2[%c25] : memref<126xf32, #tpu.memory_space<smem>>
    %128 = vector.broadcast %127 : f32 to vector<1x128xf32>
    %129 = arith.mulf %3, %128 : vector<1x128xf32>
    %130 = arith.addf %126, %129 : vector<1x128xf32>
    %c26 = arith.constant 26 : index
    %131 = memref.load %arg2[%c26] : memref<126xf32, #tpu.memory_space<smem>>
    %132 = vector.broadcast %131 : f32 to vector<1x128xf32>
    %133 = arith.mulf %5, %132 : vector<1x128xf32>
    %134 = arith.addf %130, %133 : vector<1x128xf32>
    %c27 = arith.constant 27 : index
    %135 = memref.load %arg2[%c27] : memref<126xf32, #tpu.memory_space<smem>>
    %136 = vector.broadcast %135 : f32 to vector<1x128xf32>
    %137 = arith.mulf %7, %136 : vector<1x128xf32>
    %138 = arith.addf %134, %137 : vector<1x128xf32>
    %c28 = arith.constant 28 : index
    %139 = memref.load %arg2[%c28] : memref<126xf32, #tpu.memory_space<smem>>
    %140 = vector.broadcast %139 : f32 to vector<1x128xf32>
    %141 = arith.mulf %9, %140 : vector<1x128xf32>
    %142 = arith.addf %138, %141 : vector<1x128xf32>
    %c29 = arith.constant 29 : index
    %143 = memref.load %arg2[%c29] : memref<126xf32, #tpu.memory_space<smem>>
    %144 = vector.broadcast %143 : f32 to vector<1x128xf32>
    %145 = arith.mulf %11, %144 : vector<1x128xf32>
    %146 = arith.addf %142, %145 : vector<1x128xf32>
    %c30 = arith.constant 30 : index
    %147 = memref.load %arg2[%c30] : memref<126xf32, #tpu.memory_space<smem>>
    %148 = vector.broadcast %147 : f32 to vector<1x128xf32>
    %149 = arith.mulf %13, %148 : vector<1x128xf32>
    %150 = arith.addf %146, %149 : vector<1x128xf32>
    %c31 = arith.constant 31 : index
    %151 = memref.load %arg2[%c31] : memref<126xf32, #tpu.memory_space<smem>>
    %152 = vector.broadcast %151 : f32 to vector<1x128xf32>
    %153 = arith.mulf %15, %152 : vector<1x128xf32>
    %154 = arith.addf %150, %153 : vector<1x128xf32>
    %c51 = arith.constant 51 : index
    %155 = memref.load %arg2[%c51] : memref<126xf32, #tpu.memory_space<smem>>
    %156 = vector.broadcast %155 : f32 to vector<1x128xf32>
    %157 = arith.addf %154, %156 : vector<1x128xf32>
    %cst_26 = arith.constant 0.000000e+00 : f32
    %158 = vector.broadcast %cst_26 : f32 to vector<1x128xf32>
    %159 = arith.maximumf %157, %158 : vector<1x128xf32>
    %c32 = arith.constant 32 : index
    %160 = memref.load %arg2[%c32] : memref<126xf32, #tpu.memory_space<smem>>
    %161 = vector.broadcast %160 : f32 to vector<1x128xf32>
    %162 = arith.mulf %1, %161 : vector<1x128xf32>
    %c33 = arith.constant 33 : index
    %163 = memref.load %arg2[%c33] : memref<126xf32, #tpu.memory_space<smem>>
    %164 = vector.broadcast %163 : f32 to vector<1x128xf32>
    %165 = arith.mulf %3, %164 : vector<1x128xf32>
    %166 = arith.addf %162, %165 : vector<1x128xf32>
    %c34 = arith.constant 34 : index
    %167 = memref.load %arg2[%c34] : memref<126xf32, #tpu.memory_space<smem>>
    %168 = vector.broadcast %167 : f32 to vector<1x128xf32>
    %169 = arith.mulf %5, %168 : vector<1x128xf32>
    %170 = arith.addf %166, %169 : vector<1x128xf32>
    %c35 = arith.constant 35 : index
    %171 = memref.load %arg2[%c35] : memref<126xf32, #tpu.memory_space<smem>>
    %172 = vector.broadcast %171 : f32 to vector<1x128xf32>
    %173 = arith.mulf %7, %172 : vector<1x128xf32>
    %174 = arith.addf %170, %173 : vector<1x128xf32>
    %c36 = arith.constant 36 : index
    %175 = memref.load %arg2[%c36] : memref<126xf32, #tpu.memory_space<smem>>
    %176 = vector.broadcast %175 : f32 to vector<1x128xf32>
    %177 = arith.mulf %9, %176 : vector<1x128xf32>
    %178 = arith.addf %174, %177 : vector<1x128xf32>
    %c37 = arith.constant 37 : index
    %179 = memref.load %arg2[%c37] : memref<126xf32, #tpu.memory_space<smem>>
    %180 = vector.broadcast %179 : f32 to vector<1x128xf32>
    %181 = arith.mulf %11, %180 : vector<1x128xf32>
    %182 = arith.addf %178, %181 : vector<1x128xf32>
    %c38 = arith.constant 38 : index
    %183 = memref.load %arg2[%c38] : memref<126xf32, #tpu.memory_space<smem>>
    %184 = vector.broadcast %183 : f32 to vector<1x128xf32>
    %185 = arith.mulf %13, %184 : vector<1x128xf32>
    %186 = arith.addf %182, %185 : vector<1x128xf32>
    %c39 = arith.constant 39 : index
    %187 = memref.load %arg2[%c39] : memref<126xf32, #tpu.memory_space<smem>>
    %188 = vector.broadcast %187 : f32 to vector<1x128xf32>
    %189 = arith.mulf %15, %188 : vector<1x128xf32>
    %190 = arith.addf %186, %189 : vector<1x128xf32>
    %c52 = arith.constant 52 : index
    %191 = memref.load %arg2[%c52] : memref<126xf32, #tpu.memory_space<smem>>
    %192 = vector.broadcast %191 : f32 to vector<1x128xf32>
    %193 = arith.addf %190, %192 : vector<1x128xf32>
    %cst_27 = arith.constant 0.000000e+00 : f32
    %194 = vector.broadcast %cst_27 : f32 to vector<1x128xf32>
    %195 = arith.maximumf %193, %194 : vector<1x128xf32>
    %c40 = arith.constant 40 : index
    %196 = memref.load %arg2[%c40] : memref<126xf32, #tpu.memory_space<smem>>
    %197 = vector.broadcast %196 : f32 to vector<1x128xf32>
    %198 = arith.mulf %1, %197 : vector<1x128xf32>
    %c41 = arith.constant 41 : index
    %199 = memref.load %arg2[%c41] : memref<126xf32, #tpu.memory_space<smem>>
    %200 = vector.broadcast %199 : f32 to vector<1x128xf32>
    %201 = arith.mulf %3, %200 : vector<1x128xf32>
    %202 = arith.addf %198, %201 : vector<1x128xf32>
    %c42 = arith.constant 42 : index
    %203 = memref.load %arg2[%c42] : memref<126xf32, #tpu.memory_space<smem>>
    %204 = vector.broadcast %203 : f32 to vector<1x128xf32>
    %205 = arith.mulf %5, %204 : vector<1x128xf32>
    %206 = arith.addf %202, %205 : vector<1x128xf32>
    %c43 = arith.constant 43 : index
    %207 = memref.load %arg2[%c43] : memref<126xf32, #tpu.memory_space<smem>>
    %208 = vector.broadcast %207 : f32 to vector<1x128xf32>
    %209 = arith.mulf %7, %208 : vector<1x128xf32>
    %210 = arith.addf %206, %209 : vector<1x128xf32>
    %c44 = arith.constant 44 : index
    %211 = memref.load %arg2[%c44] : memref<126xf32, #tpu.memory_space<smem>>
    %212 = vector.broadcast %211 : f32 to vector<1x128xf32>
    %213 = arith.mulf %9, %212 : vector<1x128xf32>
    %214 = arith.addf %210, %213 : vector<1x128xf32>
    %c45 = arith.constant 45 : index
    %215 = memref.load %arg2[%c45] : memref<126xf32, #tpu.memory_space<smem>>
    %216 = vector.broadcast %215 : f32 to vector<1x128xf32>
    %217 = arith.mulf %11, %216 : vector<1x128xf32>
    %218 = arith.addf %214, %217 : vector<1x128xf32>
    %c46 = arith.constant 46 : index
    %219 = memref.load %arg2[%c46] : memref<126xf32, #tpu.memory_space<smem>>
    %220 = vector.broadcast %219 : f32 to vector<1x128xf32>
    %221 = arith.mulf %13, %220 : vector<1x128xf32>
    %222 = arith.addf %218, %221 : vector<1x128xf32>
    %c47 = arith.constant 47 : index
    %223 = memref.load %arg2[%c47] : memref<126xf32, #tpu.memory_space<smem>>
    %224 = vector.broadcast %223 : f32 to vector<1x128xf32>
    %225 = arith.mulf %15, %224 : vector<1x128xf32>
    %226 = arith.addf %222, %225 : vector<1x128xf32>
    %c53 = arith.constant 53 : index
    %227 = memref.load %arg2[%c53] : memref<126xf32, #tpu.memory_space<smem>>
    %228 = vector.broadcast %227 : f32 to vector<1x128xf32>
    %229 = arith.addf %226, %228 : vector<1x128xf32>
    %cst_28 = arith.constant 0.000000e+00 : f32
    %230 = vector.broadcast %cst_28 : f32 to vector<1x128xf32>
    %231 = arith.maximumf %229, %230 : vector<1x128xf32>
    %c54 = arith.constant 54 : index
    %232 = memref.load %arg2[%c54] : memref<126xf32, #tpu.memory_space<smem>>
    %233 = vector.broadcast %232 : f32 to vector<1x128xf32>
    %234 = arith.mulf %51, %233 : vector<1x128xf32>
    %c55 = arith.constant 55 : index
    %235 = memref.load %arg2[%c55] : memref<126xf32, #tpu.memory_space<smem>>
    %236 = vector.broadcast %235 : f32 to vector<1x128xf32>
    %237 = arith.mulf %87, %236 : vector<1x128xf32>
    %238 = arith.addf %234, %237 : vector<1x128xf32>
    %c56 = arith.constant 56 : index
    %239 = memref.load %arg2[%c56] : memref<126xf32, #tpu.memory_space<smem>>
    %240 = vector.broadcast %239 : f32 to vector<1x128xf32>
    %241 = arith.mulf %123, %240 : vector<1x128xf32>
    %242 = arith.addf %238, %241 : vector<1x128xf32>
    %c57 = arith.constant 57 : index
    %243 = memref.load %arg2[%c57] : memref<126xf32, #tpu.memory_space<smem>>
    %244 = vector.broadcast %243 : f32 to vector<1x128xf32>
    %245 = arith.mulf %159, %244 : vector<1x128xf32>
    %246 = arith.addf %242, %245 : vector<1x128xf32>
    %c58 = arith.constant 58 : index
    %247 = memref.load %arg2[%c58] : memref<126xf32, #tpu.memory_space<smem>>
    %248 = vector.broadcast %247 : f32 to vector<1x128xf32>
    %249 = arith.mulf %195, %248 : vector<1x128xf32>
    %250 = arith.addf %246, %249 : vector<1x128xf32>
    %c59 = arith.constant 59 : index
    %251 = memref.load %arg2[%c59] : memref<126xf32, #tpu.memory_space<smem>>
    %252 = vector.broadcast %251 : f32 to vector<1x128xf32>
    %253 = arith.mulf %231, %252 : vector<1x128xf32>
    %254 = arith.addf %250, %253 : vector<1x128xf32>
    %c84 = arith.constant 84 : index
    %255 = memref.load %arg2[%c84] : memref<126xf32, #tpu.memory_space<smem>>
    %256 = vector.broadcast %255 : f32 to vector<1x128xf32>
    %257 = arith.addf %254, %256 : vector<1x128xf32>
    %cst_29 = arith.constant 0.000000e+00 : f32
    %258 = vector.broadcast %cst_29 : f32 to vector<1x128xf32>
    %259 = arith.maximumf %257, %258 : vector<1x128xf32>
    %c60 = arith.constant 60 : index
    %260 = memref.load %arg2[%c60] : memref<126xf32, #tpu.memory_space<smem>>
    %261 = vector.broadcast %260 : f32 to vector<1x128xf32>
    %262 = arith.mulf %51, %261 : vector<1x128xf32>
    %c61 = arith.constant 61 : index
    %263 = memref.load %arg2[%c61] : memref<126xf32, #tpu.memory_space<smem>>
    %264 = vector.broadcast %263 : f32 to vector<1x128xf32>
    %265 = arith.mulf %87, %264 : vector<1x128xf32>
    %266 = arith.addf %262, %265 : vector<1x128xf32>
    %c62 = arith.constant 62 : index
    %267 = memref.load %arg2[%c62] : memref<126xf32, #tpu.memory_space<smem>>
    %268 = vector.broadcast %267 : f32 to vector<1x128xf32>
    %269 = arith.mulf %123, %268 : vector<1x128xf32>
    %270 = arith.addf %266, %269 : vector<1x128xf32>
    %c63 = arith.constant 63 : index
    %271 = memref.load %arg2[%c63] : memref<126xf32, #tpu.memory_space<smem>>
    %272 = vector.broadcast %271 : f32 to vector<1x128xf32>
    %273 = arith.mulf %159, %272 : vector<1x128xf32>
    %274 = arith.addf %270, %273 : vector<1x128xf32>
    %c64 = arith.constant 64 : index
    %275 = memref.load %arg2[%c64] : memref<126xf32, #tpu.memory_space<smem>>
    %276 = vector.broadcast %275 : f32 to vector<1x128xf32>
    %277 = arith.mulf %195, %276 : vector<1x128xf32>
    %278 = arith.addf %274, %277 : vector<1x128xf32>
    %c65 = arith.constant 65 : index
    %279 = memref.load %arg2[%c65] : memref<126xf32, #tpu.memory_space<smem>>
    %280 = vector.broadcast %279 : f32 to vector<1x128xf32>
    %281 = arith.mulf %231, %280 : vector<1x128xf32>
    %282 = arith.addf %278, %281 : vector<1x128xf32>
    %c85 = arith.constant 85 : index
    %283 = memref.load %arg2[%c85] : memref<126xf32, #tpu.memory_space<smem>>
    %284 = vector.broadcast %283 : f32 to vector<1x128xf32>
    %285 = arith.addf %282, %284 : vector<1x128xf32>
    %cst_30 = arith.constant 0.000000e+00 : f32
    %286 = vector.broadcast %cst_30 : f32 to vector<1x128xf32>
    %287 = arith.maximumf %285, %286 : vector<1x128xf32>
    %c66 = arith.constant 66 : index
    %288 = memref.load %arg2[%c66] : memref<126xf32, #tpu.memory_space<smem>>
    %289 = vector.broadcast %288 : f32 to vector<1x128xf32>
    %290 = arith.mulf %51, %289 : vector<1x128xf32>
    %c67 = arith.constant 67 : index
    %291 = memref.load %arg2[%c67] : memref<126xf32, #tpu.memory_space<smem>>
    %292 = vector.broadcast %291 : f32 to vector<1x128xf32>
    %293 = arith.mulf %87, %292 : vector<1x128xf32>
    %294 = arith.addf %290, %293 : vector<1x128xf32>
    %c68 = arith.constant 68 : index
    %295 = memref.load %arg2[%c68] : memref<126xf32, #tpu.memory_space<smem>>
    %296 = vector.broadcast %295 : f32 to vector<1x128xf32>
    %297 = arith.mulf %123, %296 : vector<1x128xf32>
    %298 = arith.addf %294, %297 : vector<1x128xf32>
    %c69 = arith.constant 69 : index
    %299 = memref.load %arg2[%c69] : memref<126xf32, #tpu.memory_space<smem>>
    %300 = vector.broadcast %299 : f32 to vector<1x128xf32>
    %301 = arith.mulf %159, %300 : vector<1x128xf32>
    %302 = arith.addf %298, %301 : vector<1x128xf32>
    %c70 = arith.constant 70 : index
    %303 = memref.load %arg2[%c70] : memref<126xf32, #tpu.memory_space<smem>>
    %304 = vector.broadcast %303 : f32 to vector<1x128xf32>
    %305 = arith.mulf %195, %304 : vector<1x128xf32>
    %306 = arith.addf %302, %305 : vector<1x128xf32>
    %c71 = arith.constant 71 : index
    %307 = memref.load %arg2[%c71] : memref<126xf32, #tpu.memory_space<smem>>
    %308 = vector.broadcast %307 : f32 to vector<1x128xf32>
    %309 = arith.mulf %231, %308 : vector<1x128xf32>
    %310 = arith.addf %306, %309 : vector<1x128xf32>
    %c86 = arith.constant 86 : index
    %311 = memref.load %arg2[%c86] : memref<126xf32, #tpu.memory_space<smem>>
    %312 = vector.broadcast %311 : f32 to vector<1x128xf32>
    %313 = arith.addf %310, %312 : vector<1x128xf32>
    %cst_31 = arith.constant 0.000000e+00 : f32
    %314 = vector.broadcast %cst_31 : f32 to vector<1x128xf32>
    %315 = arith.maximumf %313, %314 : vector<1x128xf32>
    %c72 = arith.constant 72 : index
    %316 = memref.load %arg2[%c72] : memref<126xf32, #tpu.memory_space<smem>>
    %317 = vector.broadcast %316 : f32 to vector<1x128xf32>
    %318 = arith.mulf %51, %317 : vector<1x128xf32>
    %c73 = arith.constant 73 : index
    %319 = memref.load %arg2[%c73] : memref<126xf32, #tpu.memory_space<smem>>
    %320 = vector.broadcast %319 : f32 to vector<1x128xf32>
    %321 = arith.mulf %87, %320 : vector<1x128xf32>
    %322 = arith.addf %318, %321 : vector<1x128xf32>
    %c74 = arith.constant 74 : index
    %323 = memref.load %arg2[%c74] : memref<126xf32, #tpu.memory_space<smem>>
    %324 = vector.broadcast %323 : f32 to vector<1x128xf32>
    %325 = arith.mulf %123, %324 : vector<1x128xf32>
    %326 = arith.addf %322, %325 : vector<1x128xf32>
    %c75 = arith.constant 75 : index
    %327 = memref.load %arg2[%c75] : memref<126xf32, #tpu.memory_space<smem>>
    %328 = vector.broadcast %327 : f32 to vector<1x128xf32>
    %329 = arith.mulf %159, %328 : vector<1x128xf32>
    %330 = arith.addf %326, %329 : vector<1x128xf32>
    %c76 = arith.constant 76 : index
    %331 = memref.load %arg2[%c76] : memref<126xf32, #tpu.memory_space<smem>>
    %332 = vector.broadcast %331 : f32 to vector<1x128xf32>
    %333 = arith.mulf %195, %332 : vector<1x128xf32>
    %334 = arith.addf %330, %333 : vector<1x128xf32>
    %c77 = arith.constant 77 : index
    %335 = memref.load %arg2[%c77] : memref<126xf32, #tpu.memory_space<smem>>
    %336 = vector.broadcast %335 : f32 to vector<1x128xf32>
    %337 = arith.mulf %231, %336 : vector<1x128xf32>
    %338 = arith.addf %334, %337 : vector<1x128xf32>
    %c87 = arith.constant 87 : index
    %339 = memref.load %arg2[%c87] : memref<126xf32, #tpu.memory_space<smem>>
    %340 = vector.broadcast %339 : f32 to vector<1x128xf32>
    %341 = arith.addf %338, %340 : vector<1x128xf32>
    %cst_32 = arith.constant 0.000000e+00 : f32
    %342 = vector.broadcast %cst_32 : f32 to vector<1x128xf32>
    %343 = arith.maximumf %341, %342 : vector<1x128xf32>
    %c78 = arith.constant 78 : index
    %344 = memref.load %arg2[%c78] : memref<126xf32, #tpu.memory_space<smem>>
    %345 = vector.broadcast %344 : f32 to vector<1x128xf32>
    %346 = arith.mulf %51, %345 : vector<1x128xf32>
    %c79 = arith.constant 79 : index
    %347 = memref.load %arg2[%c79] : memref<126xf32, #tpu.memory_space<smem>>
    %348 = vector.broadcast %347 : f32 to vector<1x128xf32>
    %349 = arith.mulf %87, %348 : vector<1x128xf32>
    %350 = arith.addf %346, %349 : vector<1x128xf32>
    %c80 = arith.constant 80 : index
    %351 = memref.load %arg2[%c80] : memref<126xf32, #tpu.memory_space<smem>>
    %352 = vector.broadcast %351 : f32 to vector<1x128xf32>
    %353 = arith.mulf %123, %352 : vector<1x128xf32>
    %354 = arith.addf %350, %353 : vector<1x128xf32>
    %c81 = arith.constant 81 : index
    %355 = memref.load %arg2[%c81] : memref<126xf32, #tpu.memory_space<smem>>
    %356 = vector.broadcast %355 : f32 to vector<1x128xf32>
    %357 = arith.mulf %159, %356 : vector<1x128xf32>
    %358 = arith.addf %354, %357 : vector<1x128xf32>
    %c82 = arith.constant 82 : index
    %359 = memref.load %arg2[%c82] : memref<126xf32, #tpu.memory_space<smem>>
    %360 = vector.broadcast %359 : f32 to vector<1x128xf32>
    %361 = arith.mulf %195, %360 : vector<1x128xf32>
    %362 = arith.addf %358, %361 : vector<1x128xf32>
    %c83 = arith.constant 83 : index
    %363 = memref.load %arg2[%c83] : memref<126xf32, #tpu.memory_space<smem>>
    %364 = vector.broadcast %363 : f32 to vector<1x128xf32>
    %365 = arith.mulf %231, %364 : vector<1x128xf32>
    %366 = arith.addf %362, %365 : vector<1x128xf32>
    %c88 = arith.constant 88 : index
    %367 = memref.load %arg2[%c88] : memref<126xf32, #tpu.memory_space<smem>>
    %368 = vector.broadcast %367 : f32 to vector<1x128xf32>
    %369 = arith.addf %366, %368 : vector<1x128xf32>
    %cst_33 = arith.constant 0.000000e+00 : f32
    %370 = vector.broadcast %cst_33 : f32 to vector<1x128xf32>
    %371 = arith.maximumf %369, %370 : vector<1x128xf32>
    %c89 = arith.constant 89 : index
    %372 = memref.load %arg2[%c89] : memref<126xf32, #tpu.memory_space<smem>>
    %373 = vector.broadcast %372 : f32 to vector<1x128xf32>
    %374 = arith.mulf %259, %373 : vector<1x128xf32>
    %c90 = arith.constant 90 : index
    %375 = memref.load %arg2[%c90] : memref<126xf32, #tpu.memory_space<smem>>
    %376 = vector.broadcast %375 : f32 to vector<1x128xf32>
    %377 = arith.mulf %287, %376 : vector<1x128xf32>
    %378 = arith.addf %374, %377 : vector<1x128xf32>
    %c91 = arith.constant 91 : index
    %379 = memref.load %arg2[%c91] : memref<126xf32, #tpu.memory_space<smem>>
    %380 = vector.broadcast %379 : f32 to vector<1x128xf32>
    %381 = arith.mulf %315, %380 : vector<1x128xf32>
    %382 = arith.addf %378, %381 : vector<1x128xf32>
    %c92 = arith.constant 92 : index
    %383 = memref.load %arg2[%c92] : memref<126xf32, #tpu.memory_space<smem>>
    %384 = vector.broadcast %383 : f32 to vector<1x128xf32>
    %385 = arith.mulf %343, %384 : vector<1x128xf32>
    %386 = arith.addf %382, %385 : vector<1x128xf32>
    %c93 = arith.constant 93 : index
    %387 = memref.load %arg2[%c93] : memref<126xf32, #tpu.memory_space<smem>>
    %388 = vector.broadcast %387 : f32 to vector<1x128xf32>
    %389 = arith.mulf %371, %388 : vector<1x128xf32>
    %390 = arith.addf %386, %389 : vector<1x128xf32>
    %c109 = arith.constant 109 : index
    %391 = memref.load %arg2[%c109] : memref<126xf32, #tpu.memory_space<smem>>
    %392 = vector.broadcast %391 : f32 to vector<1x128xf32>
    %393 = arith.addf %390, %392 : vector<1x128xf32>
    %cst_34 = arith.constant 0.000000e+00 : f32
    %394 = vector.broadcast %cst_34 : f32 to vector<1x128xf32>
    %395 = arith.maximumf %393, %394 : vector<1x128xf32>
    %c94 = arith.constant 94 : index
    %396 = memref.load %arg2[%c94] : memref<126xf32, #tpu.memory_space<smem>>
    %397 = vector.broadcast %396 : f32 to vector<1x128xf32>
    %398 = arith.mulf %259, %397 : vector<1x128xf32>
    %c95 = arith.constant 95 : index
    %399 = memref.load %arg2[%c95] : memref<126xf32, #tpu.memory_space<smem>>
    %400 = vector.broadcast %399 : f32 to vector<1x128xf32>
    %401 = arith.mulf %287, %400 : vector<1x128xf32>
    %402 = arith.addf %398, %401 : vector<1x128xf32>
    %c96 = arith.constant 96 : index
    %403 = memref.load %arg2[%c96] : memref<126xf32, #tpu.memory_space<smem>>
    %404 = vector.broadcast %403 : f32 to vector<1x128xf32>
    %405 = arith.mulf %315, %404 : vector<1x128xf32>
    %406 = arith.addf %402, %405 : vector<1x128xf32>
    %c97 = arith.constant 97 : index
    %407 = memref.load %arg2[%c97] : memref<126xf32, #tpu.memory_space<smem>>
    %408 = vector.broadcast %407 : f32 to vector<1x128xf32>
    %409 = arith.mulf %343, %408 : vector<1x128xf32>
    %410 = arith.addf %406, %409 : vector<1x128xf32>
    %c98 = arith.constant 98 : index
    %411 = memref.load %arg2[%c98] : memref<126xf32, #tpu.memory_space<smem>>
    %412 = vector.broadcast %411 : f32 to vector<1x128xf32>
    %413 = arith.mulf %371, %412 : vector<1x128xf32>
    %414 = arith.addf %410, %413 : vector<1x128xf32>
    %c110 = arith.constant 110 : index
    %415 = memref.load %arg2[%c110] : memref<126xf32, #tpu.memory_space<smem>>
    %416 = vector.broadcast %415 : f32 to vector<1x128xf32>
    %417 = arith.addf %414, %416 : vector<1x128xf32>
    %cst_35 = arith.constant 0.000000e+00 : f32
    %418 = vector.broadcast %cst_35 : f32 to vector<1x128xf32>
    %419 = arith.maximumf %417, %418 : vector<1x128xf32>
    %c99 = arith.constant 99 : index
    %420 = memref.load %arg2[%c99] : memref<126xf32, #tpu.memory_space<smem>>
    %421 = vector.broadcast %420 : f32 to vector<1x128xf32>
    %422 = arith.mulf %259, %421 : vector<1x128xf32>
    %c100 = arith.constant 100 : index
    %423 = memref.load %arg2[%c100] : memref<126xf32, #tpu.memory_space<smem>>
    %424 = vector.broadcast %423 : f32 to vector<1x128xf32>
    %425 = arith.mulf %287, %424 : vector<1x128xf32>
    %426 = arith.addf %422, %425 : vector<1x128xf32>
    %c101 = arith.constant 101 : index
    %427 = memref.load %arg2[%c101] : memref<126xf32, #tpu.memory_space<smem>>
    %428 = vector.broadcast %427 : f32 to vector<1x128xf32>
    %429 = arith.mulf %315, %428 : vector<1x128xf32>
    %430 = arith.addf %426, %429 : vector<1x128xf32>
    %c102 = arith.constant 102 : index
    %431 = memref.load %arg2[%c102] : memref<126xf32, #tpu.memory_space<smem>>
    %432 = vector.broadcast %431 : f32 to vector<1x128xf32>
    %433 = arith.mulf %343, %432 : vector<1x128xf32>
    %434 = arith.addf %430, %433 : vector<1x128xf32>
    %c103 = arith.constant 103 : index
    %435 = memref.load %arg2[%c103] : memref<126xf32, #tpu.memory_space<smem>>
    %436 = vector.broadcast %435 : f32 to vector<1x128xf32>
    %437 = arith.mulf %371, %436 : vector<1x128xf32>
    %438 = arith.addf %434, %437 : vector<1x128xf32>
    %c111 = arith.constant 111 : index
    %439 = memref.load %arg2[%c111] : memref<126xf32, #tpu.memory_space<smem>>
    %440 = vector.broadcast %439 : f32 to vector<1x128xf32>
    %441 = arith.addf %438, %440 : vector<1x128xf32>
    %cst_36 = arith.constant 0.000000e+00 : f32
    %442 = vector.broadcast %cst_36 : f32 to vector<1x128xf32>
    %443 = arith.maximumf %441, %442 : vector<1x128xf32>
    %c104 = arith.constant 104 : index
    %444 = memref.load %arg2[%c104] : memref<126xf32, #tpu.memory_space<smem>>
    %445 = vector.broadcast %444 : f32 to vector<1x128xf32>
    %446 = arith.mulf %259, %445 : vector<1x128xf32>
    %c105 = arith.constant 105 : index
    %447 = memref.load %arg2[%c105] : memref<126xf32, #tpu.memory_space<smem>>
    %448 = vector.broadcast %447 : f32 to vector<1x128xf32>
    %449 = arith.mulf %287, %448 : vector<1x128xf32>
    %450 = arith.addf %446, %449 : vector<1x128xf32>
    %c106 = arith.constant 106 : index
    %451 = memref.load %arg2[%c106] : memref<126xf32, #tpu.memory_space<smem>>
    %452 = vector.broadcast %451 : f32 to vector<1x128xf32>
    %453 = arith.mulf %315, %452 : vector<1x128xf32>
    %454 = arith.addf %450, %453 : vector<1x128xf32>
    %c107 = arith.constant 107 : index
    %455 = memref.load %arg2[%c107] : memref<126xf32, #tpu.memory_space<smem>>
    %456 = vector.broadcast %455 : f32 to vector<1x128xf32>
    %457 = arith.mulf %343, %456 : vector<1x128xf32>
    %458 = arith.addf %454, %457 : vector<1x128xf32>
    %c108 = arith.constant 108 : index
    %459 = memref.load %arg2[%c108] : memref<126xf32, #tpu.memory_space<smem>>
    %460 = vector.broadcast %459 : f32 to vector<1x128xf32>
    %461 = arith.mulf %371, %460 : vector<1x128xf32>
    %462 = arith.addf %458, %461 : vector<1x128xf32>
    %c112 = arith.constant 112 : index
    %463 = memref.load %arg2[%c112] : memref<126xf32, #tpu.memory_space<smem>>
    %464 = vector.broadcast %463 : f32 to vector<1x128xf32>
    %465 = arith.addf %462, %464 : vector<1x128xf32>
    %cst_37 = arith.constant 0.000000e+00 : f32
    %466 = vector.broadcast %cst_37 : f32 to vector<1x128xf32>
    %467 = arith.maximumf %465, %466 : vector<1x128xf32>
    %c113 = arith.constant 113 : index
    %468 = memref.load %arg2[%c113] : memref<126xf32, #tpu.memory_space<smem>>
    %469 = vector.broadcast %468 : f32 to vector<1x128xf32>
    %470 = arith.mulf %395, %469 : vector<1x128xf32>
    %c114 = arith.constant 114 : index
    %471 = memref.load %arg2[%c114] : memref<126xf32, #tpu.memory_space<smem>>
    %472 = vector.broadcast %471 : f32 to vector<1x128xf32>
    %473 = arith.mulf %419, %472 : vector<1x128xf32>
    %474 = arith.addf %470, %473 : vector<1x128xf32>
    %c115 = arith.constant 115 : index
    %475 = memref.load %arg2[%c115] : memref<126xf32, #tpu.memory_space<smem>>
    %476 = vector.broadcast %475 : f32 to vector<1x128xf32>
    %477 = arith.mulf %443, %476 : vector<1x128xf32>
    %478 = arith.addf %474, %477 : vector<1x128xf32>
    %c116 = arith.constant 116 : index
    %479 = memref.load %arg2[%c116] : memref<126xf32, #tpu.memory_space<smem>>
    %480 = vector.broadcast %479 : f32 to vector<1x128xf32>
    %481 = arith.mulf %467, %480 : vector<1x128xf32>
    %482 = arith.addf %478, %481 : vector<1x128xf32>
    %c121 = arith.constant 121 : index
    %483 = memref.load %arg2[%c121] : memref<126xf32, #tpu.memory_space<smem>>
    %484 = vector.broadcast %483 : f32 to vector<1x128xf32>
    %485 = arith.addf %482, %484 : vector<1x128xf32>
    %cst_38 = arith.constant 0.000000e+00 : f32
    %486 = vector.broadcast %cst_38 : f32 to vector<1x128xf32>
    %487 = arith.maximumf %485, %486 : vector<1x128xf32>
    %c117 = arith.constant 117 : index
    %488 = memref.load %arg2[%c117] : memref<126xf32, #tpu.memory_space<smem>>
    %489 = vector.broadcast %488 : f32 to vector<1x128xf32>
    %490 = arith.mulf %395, %489 : vector<1x128xf32>
    %c118 = arith.constant 118 : index
    %491 = memref.load %arg2[%c118] : memref<126xf32, #tpu.memory_space<smem>>
    %492 = vector.broadcast %491 : f32 to vector<1x128xf32>
    %493 = arith.mulf %419, %492 : vector<1x128xf32>
    %494 = arith.addf %490, %493 : vector<1x128xf32>
    %c119 = arith.constant 119 : index
    %495 = memref.load %arg2[%c119] : memref<126xf32, #tpu.memory_space<smem>>
    %496 = vector.broadcast %495 : f32 to vector<1x128xf32>
    %497 = arith.mulf %443, %496 : vector<1x128xf32>
    %498 = arith.addf %494, %497 : vector<1x128xf32>
    %c120 = arith.constant 120 : index
    %499 = memref.load %arg2[%c120] : memref<126xf32, #tpu.memory_space<smem>>
    %500 = vector.broadcast %499 : f32 to vector<1x128xf32>
    %501 = arith.mulf %467, %500 : vector<1x128xf32>
    %502 = arith.addf %498, %501 : vector<1x128xf32>
    %c122 = arith.constant 122 : index
    %503 = memref.load %arg2[%c122] : memref<126xf32, #tpu.memory_space<smem>>
    %504 = vector.broadcast %503 : f32 to vector<1x128xf32>
    %505 = arith.addf %502, %504 : vector<1x128xf32>
    %cst_39 = arith.constant 0.000000e+00 : f32
    %506 = vector.broadcast %cst_39 : f32 to vector<1x128xf32>
    %507 = arith.maximumf %505, %506 : vector<1x128xf32>
    %c123 = arith.constant 123 : index
    %508 = memref.load %arg2[%c123] : memref<126xf32, #tpu.memory_space<smem>>
    %509 = vector.broadcast %508 : f32 to vector<1x128xf32>
    %510 = arith.mulf %487, %509 : vector<1x128xf32>
    %c124 = arith.constant 124 : index
    %511 = memref.load %arg2[%c124] : memref<126xf32, #tpu.memory_space<smem>>
    %512 = vector.broadcast %511 : f32 to vector<1x128xf32>
    %513 = arith.mulf %507, %512 : vector<1x128xf32>
    %514 = arith.addf %510, %513 : vector<1x128xf32>
    %c125 = arith.constant 125 : index
    %515 = memref.load %arg2[%c125] : memref<126xf32, #tpu.memory_space<smem>>
    %516 = vector.broadcast %515 : f32 to vector<1x128xf32>
    %517 = arith.addf %514, %516 : vector<1x128xf32>
    %cst_40 = arith.constant 0.000000e+00 : f32
    %518 = vector.broadcast %cst_40 : f32 to vector<1x128xf32>
    %519 = arith.subf %518, %517 : vector<1x128xf32>
    %520 = math.exp %519 : vector<1x128xf32>
    %cst_41 = arith.constant 1.000000e+00 : f32
    %521 = vector.broadcast %cst_41 : f32 to vector<1x128xf32>
    %522 = arith.addf %521, %520 : vector<1x128xf32>
    %cst_42 = arith.constant 1.000000e+00 : f32
    %523 = vector.broadcast %cst_42 : f32 to vector<1x128xf32>
    %524 = arith.divf %523, %522 : vector<1x128xf32>
    %c0_43 = arith.constant 0 : index
    %c0_44 = arith.constant 0 : index
    %c0_45 = arith.constant 0 : index
    %525 = vector.load %arg3[%c0_43, %c0_44, %c0_45] : memref<1x1x128xf32, #tpu.memory_space<vmem>>, vector<1x1x128xf32>
    %526 = vector.shape_cast %525 : vector<1x1x128xf32> to vector<1x128xf32>
    %527 = vector.shape_cast %524 : vector<1x128xf32> to vector<1x1x128xf32>
    tpu.vector_store %arg3[%c0_43, %c0_44, %c0_45], %527 {strides = array<i32>} : memref<1x1x128xf32, #tpu.memory_space<vmem>>, vector<1x1x128xf32>,
    return
  }
  func.func @transform_0(%arg0: i32) -> (i32, i32, i32) {
    %c0_i32 = arith.constant 0 : i32
    %c0_i32_0 = arith.constant 0 : i32
    %c0_i32_1 = arith.constant 0 : i32
    return %c0_i32, %arg0, %c0_i32_0 : i32, i32, i32
  }
  func.func @transform_1(%arg0: i32) -> i32 {
    %c0_i32 = arith.constant 0 : i32
    %c0_i32_0 = arith.constant 0 : i32
    return %c0_i32 : i32
  }
  func.func @transform_2(%arg0: i32) -> (i32, i32, i32) {
    %c0_i32 = arith.constant 0 : i32
    %c0_i32_0 = arith.constant 0 : i32
    %c0_i32_1 = arith.constant 0 : i32
    return %c0_i32, %arg0, %c0_i32_0 : i32, i32, i32
  }
}

</mosaic_0001>

<bundles_post_ra>
// kernel: tpu_custom_call.1
= control target key start
LH: loop header
LB: loop body
LE: loop exit
PB: predicated region body
PF: predicated region fallthrough
CT: control target
= control target key end

     0   :  { %7 = vsyncpa [#allocation3], 0  ;;  %s1130_s0 = inlined_call_operand.hbm [shape: f32[8,1,128], index: 0, kind: input, shape index: {}]   ;;  %s1131_s1 = inlined_call_operand.hbm [shape: f32[126], index: 1, kind: input, shape index: {}]   ;;  %s1132_s2 = inlined_call_operand.hbm [shape: f32[1,1,128], index: 2, kind: output, shape index: {}]  }
   0x1   :  { %8 = vsyncpa [#allocation5], 0 }
   0x2   :  { %9 = vsyncpa [#allocation4], 0  ;;  %s14_s11 = sshll.u32 %s1130_s0, 4  ;;  %s779_s12 = smov [#allocation2]   ;;  %s15_s11 = int_to_ptr.hbm [resolvable:$true] %s14_s11 }
   0x3   :  { %s16_s13 = sshll.u32 %s779_s12, 4  ;;  %s28_s16 = sshll.u32 %s1131_s1, 4  ;;  %s17_s13 = int_to_ptr.vmem [resolvable:$true] %s16_s13  ;;  %s29_s16 = int_to_ptr.hbm [resolvable:$true] %s28_s16 }
   0x4   :  { %s780_s17 = smov 16   ;;  %s781_s18 = smov 1  }
   0x5   :  { %22 = dma.hbm_to_vmem [thread:$0]  %s15_s11, 128, %s17_s13, [#allocation3], %s780_s17, %s780_s17, %s781_s18  }
   0x6   :  { %s782_s19 = smov [#allocation6]  }
   0x7   :  { %31 = dma.hbm_to_smem %s29_s16, 16, %s782_s19, [#allocation5]  }
   0x8   :  { %773 = dma.done.wait [#allocation3], 128  }
   0x9   :  { %774 = vsyncadd [#allocation3], 4294967168 }
   0xa   :  { %775 = dma.done.wait [#allocation5], 16  }
   0xb   :  { %776 = vsyncadd [#allocation5], 4294967280 }
   0xc   :  { %40 = sfence }
   0xd   :  { %s56_s0 = sld [smem:[#allocation6]]  ;;  %v817_v0 = vld [vmem:[#allocation2] sm:$0x1]  ;;  %v819_v1 = vld [vmem:[#allocation2 + $0x1] sm:$0x1] }
   0xe   :  { %s579_s20 = sld [smem:[#allocation6 + $0x1]]  ;;  %v829_v6 = vld [vmem:[#allocation2 + $0x2] sm:$0x1]  ;;  %v838_v12 = vld [vmem:[#allocation2 + $0x3] sm:$0x1] }
   0xf   :  { %s580_s21 = sld [smem:[#allocation6 + $0x2]]  ;;  %v848_v19 = vld [vmem:[#allocation2 + $0x4] sm:$0x1]  ;;  %v864_v31 = vld [vmem:[#allocation2 + $0x5] sm:$0x1] }
  0x10   :  { %s805_s22 = sld [smem:[#allocation6 + $0x3]]  ;;  %v873_v39 = vld [vmem:[#allocation2 + $0x6] sm:$0x1]  ;;  %v895_v56 = vld [vmem:[#allocation2 + $0x7] sm:$0x1] }
  0x11   :  { %s807_s23 = sld [smem:[#allocation6 + $0x4]] }
  0x12   :  { %s809_s24 = sld [smem:[#allocation6 + $0x5]] }
  0x13   :  { %s811_s1 = sld [smem:[#allocation6 + $0x6]]  ;;  %v57_v2 = vstv %s56_s0 }
  0x14   :  { %s813_s25 = sld [smem:[#allocation6 + $0x7]]  ;;  %v60_v3 = vstv %s579_s20  ;;  %v58_v4 = vmul.f32 %v57_v2, %v817_v0 }
  0x15   :  { %s815_s26 = sld [smem:[#allocation6 + $0x30]]  ;;  %v61_v5 = vmul.f32 %v60_v3, %v819_v1  ;;  %v64_v7 = vstv %s580_s21 }
  0x16   :  { %s587_s27 = sld [smem:[#allocation6 + $0x8]]  ;;  %v65_v11 = vmul.f32 %v64_v7, %v829_v6  ;;  %v68_v13 = vstv %s805_s22 }
  0x17   :  { %s588_s28 = sld [smem:[#allocation6 + $0x9]]  ;;  %v62_v10 = vadd.f32 %v61_v5, %v58_v4  ;;  %v69_v18 = vmul.f32 %v68_v13, %v838_v12  ;;  %v72_v20 = vstv %s807_s23 }
  0x18   :  { %s589_s29 = sld [smem:[#allocation6 + $0xa]]  ;;  %v73_v28 = vmul.f32 %v72_v20, %v848_v19  ;;  %v76_v32 = vstv %s809_s24 }
  0x19   :  { %s821_s30 = sld [smem:[#allocation6 + $0xb]]  ;;  %v66_v17 = vadd.f32 %v65_v11, %v62_v10  ;;  %v77_v41 = vmul.f32 %v76_v32, %v864_v31  ;;  %v80_v42 = vstv %s811_s1 }
  0x1a   :  { %s823_s3 = sld [smem:[#allocation6 + $0xc]]  ;;  %v81_v48 = vmul.f32 %v80_v42, %v873_v39  ;;  %v84_v49 = vstv %s813_s25 }
  0x1b   :  { %s827_s4 = sld [smem:[#allocation6 + $0xd]]  ;;  %v70_v27 = vadd.f32 %v69_v18, %v66_v17 }
  0x1c   :  { %s831_s5 = sld [smem:[#allocation6 + $0xe]]  ;;  %v92_v8 = vstv %s587_s27 }
  0x1d   :  { %v95_v9 = vstv %s588_s28  ;;  %s833_s6 = sld [smem:[#allocation6 + $0xf]]  ;;  %v93_v14 = vmul.f32 %v92_v8, %v817_v0  ;;  %v74_v40 = vadd.f32 %v73_v28, %v70_v27  ;;  %v85_v8 = vmul.f32 %v84_v49, %v895_v56 }
  0x1e   :  { %s835_s7 = sld [smem:[#allocation6 + $0x31]]  ;;  %v96_v15 = vmul.f32 %v95_v9, %v819_v1  ;;  %v99_v16 = vstv %s589_s29 }
  0x1f   :  { %s596_s8 = sld [smem:[#allocation6 + $0x10]]  ;;  %v100_v22 = vmul.f32 %v99_v16, %v829_v6  ;;  %v103_v23 = vstv %s821_s30  ;;  %v78_v52 = vadd.f32 %v77_v41, %v74_v40 }
  0x20   :  { %s597_s9 = sld [smem:[#allocation6 + $0x11]]  ;;  %v97_v21 = vadd.f32 %v96_v15, %v93_v14  ;;  %v104_v34 = vmul.f32 %v103_v23, %v838_v12  ;;  %v107_v35 = vstv %s823_s3 }
  0x21   :  { %s598_s10 = sld [smem:[#allocation6 + $0x12]]  ;;  %v108_v44 = vmul.f32 %v107_v35, %v848_v19  ;;  %v111_v45 = vstv %s827_s4  ;;  %v82_v7 = vadd.f32 %v81_v48, %v78_v52 }
  0x22   :  { %s843_s11 = sld [smem:[#allocation6 + $0x13]]  ;;  %v101_v33 = vadd.f32 %v100_v22, %v97_v21  ;;  %v112_v53 = vmul.f32 %v111_v45, %v864_v31  ;;  %v115_v58 = vstv %s831_s5 }
  0x23   :  { %s846_s12 = sld [smem:[#allocation6 + $0x14]]  ;;  %v116_v11 = vmul.f32 %v115_v58, %v873_v39  ;;  %v119_v13 = vstv %s833_s6  ;;  %v86_v21 = vadd.f32 %v85_v8, %v82_v7 }
  0x24   :  { %s852_s13 = sld [smem:[#allocation6 + $0x15]]  ;;  %v105_v43 = vadd.f32 %v104_v34, %v101_v33  ;;  %v120_v22 = vmul.f32 %v119_v13, %v895_v56  ;;  %v123_v45 = vstv %s835_s7 }
  0x25   :  { %v127_v24 = vstv %s596_s8  ;;  %s855_s14 = sld [smem:[#allocation6 + $0x16]] }
  0x26   :  { %v128_v25 = vmul.f32 %v127_v24, %v817_v0  ;;  %v130_v26 = vstv %s597_s9  ;;  %s858_s15 = sld [smem:[#allocation6 + $0x17]]  ;;  %v109_v57 = vadd.f32 %v108_v44, %v105_v43  ;;  %v88_v43 = vstv %s815_s26 }
  0x27   :  { %v131_v29 = vmul.f32 %v130_v26, %v819_v1  ;;  %v134_v30 = vstv %s598_s10  ;;  %s862_s16 = sld [smem:[#allocation6 + $0x32]] }
  0x28   :  { %s605_s17 = sld [smem:[#allocation6 + $0x18]]  ;;  %v135_v37 = vmul.f32 %v134_v30, %v829_v6  ;;  %v138_v38 = vstv %s843_s11  ;;  %v113_v10 = vadd.f32 %v112_v53, %v109_v57  ;;  %v89_v53 = vadd.f32 %v88_v43, %v86_v21 }
  0x29   :  { %v132_v36 = vadd.f32 %v131_v29, %v128_v25  ;;  %s606_s18 = sld [smem:[#allocation6 + $0x19]]  ;;  %v139_v47 = vmul.f32 %v138_v38, %v838_v12  ;;  %v142_v50 = vstv %s846_s12 }
  0x2a   :  { %s871_s19 = sld [smem:[#allocation6 + $0x1a]]  ;;  %v143_v62 = vmul.f32 %v142_v50, %v848_v19  ;;  %v146_v3 = vstv %s852_s13  ;;  %v117_v25 = vadd.f32 %v116_v11, %v113_v10 }
  0x2b   :  { %s877_s0 = sld [smem:[#allocation6 + $0x1b]]  ;;  %v136_v46 = vadd.f32 %v135_v37, %v132_v36  ;;  %v147_v16 = vmul.f32 %v146_v3, %v864_v31  ;;  %v150_v17 = vstv %s855_s14 }
  0x2c   :  { %s881_s20 = sld [smem:[#allocation6 + $0x1c]]  ;;  %v151_v26 = vmul.f32 %v150_v17, %v873_v39  ;;  %v154_v30 = vstv %s858_s15  ;;  %v121_v44 = vadd.f32 %v120_v22, %v117_v25 }
  0x2d   :  { %s884_s21 = sld [smem:[#allocation6 + $0x1d]]  ;;  %v140_v61 = vadd.f32 %v139_v47, %v136_v46  ;;  %v155_v48 = vmul.f32 %v154_v30, %v895_v56 }
  0x2e   :  { %v162_v51 = vstv %s605_s17  ;;  %s889_s22 = sld [smem:[#allocation6 + $0x1e]]  ;;  %v124_v58 = vadd.f32 %v123_v45, %v121_v44 }
  0x2f   :  { %v163_v54 = vmul.f32 %v162_v51, %v817_v0  ;;  %v165_v55 = vstv %s606_s18  ;;  %s893_s23 = sld [smem:[#allocation6 + $0x1f]]  ;;  %v144_v15 = vadd.f32 %v143_v62, %v140_v61 }
  0x30   :  { %v166_v59 = vmul.f32 %v165_v55, %v819_v1  ;;  %v169_v60 = vstv %s871_s19  ;;  %s900_s24 = sld [smem:[#allocation6 + $0x33]] }
  0x31   :  { %v170_v63 = vmul.f32 %v169_v60, %v829_v6  ;;  %v173_v2 = vstv %s877_s0  ;;  %s614_s1 = sld [smem:[#allocation6 + $0x20]]  ;;  %v148_v29 = vadd.f32 %v147_v16, %v144_v15 }
  0x32   :  { %v167_v4 = vadd.f32 %v166_v59, %v163_v54  ;;  %v174_v5 = vmul.f32 %v173_v2, %v838_v12  ;;  %s615_s25 = sld [smem:[#allocation6 + $0x21]]  ;;  %v177_v9 = vstv %s881_s20  ;;  %v158_v59 = vstv %s862_s16 }
  0x33   :  { %s616_s27 = sld [smem:[#allocation6 + $0x22]]  ;;  %v178_v20 = vmul.f32 %v177_v9, %v848_v19  ;;  %v181_v23 = vstv %s884_s21  ;;  %v152_v47 = vadd.f32 %v151_v26, %v148_v29 }
  0x34   :  { %v171_v14 = vadd.f32 %v170_v63, %v167_v4  ;;  %s617_s28 = sld [smem:[#allocation6 + $0x23]]  ;;  %v182_v35 = vmul.f32 %v181_v23, %v864_v31  ;;  %v185_v38 = vstv %s889_s22 }
  0x35   :  { %s913_s29 = sld [smem:[#allocation6 + $0x24]]  ;;  %v186_v52 = vmul.f32 %v185_v38, %v873_v39  ;;  %v189_v54 = vstv %s893_s23  ;;  %v156_v62 = vadd.f32 %v155_v48, %v152_v47 }
  0x36   :  { %v175_v18 = vadd.f32 %v174_v5, %v171_v14  ;;  %s916_s30 = sld [smem:[#allocation6 + $0x25]]  ;;  %v190_v5 = vmul.f32 %v189_v54, %v895_v56  ;;  %v193_v25 = vstv %s900_s24 }
  0x37   :  { %v197_v24 = vstv %s614_s1  ;;  %s920_s3 = sld [smem:[#allocation6 + $0x26]] }
  0x38   :  { %v198_v27 = vmul.f32 %v197_v24, %v817_v0  ;;  %v200_v28 = vstv %s615_s25  ;;  %s924_s4 = sld [smem:[#allocation6 + $0x27]]  ;;  %v179_v34 = vadd.f32 %v178_v20, %v175_v18  ;;  %v159_v18 = vadd.f32 %v158_v59, %v156_v62 }
  0x39   :  { %v201_v32 = vmul.f32 %v200_v28, %v819_v1  ;;  %v204_v33 = vstv %s616_s27  ;;  %s928_s5 = sld [smem:[#allocation6 + $0x34]] }
  0x3a   :  { %v205_v36 = vmul.f32 %v204_v33, %v829_v6  ;;  %v208_v37 = vstv %s617_s28  ;;  %s932_s6 = sld [smem:[#allocation6 + $0x28]]  ;;  %v183_v51 = vadd.f32 %v182_v35, %v179_v34  ;;  %v1001_v29 = vmax.f32 %v159_v18, 0.0 }
  0x3b   :  { %v202_v40 = vadd.f32 %v201_v32, %v198_v27  ;;  %v209_v41 = vmul.f32 %v208_v37, %v838_v12  ;;  %v212_v42 = vstv %s913_s29  ;;  %s937_s8 = sld [smem:[#allocation6 + $0x29]] }
  0x3c   :  { %v216_v46 = vstv %s916_s30  ;;  %s942_s9 = sld [smem:[#allocation6 + $0x2a]]  ;;  %v213_v50 = vmul.f32 %v212_v42, %v848_v19  ;;  %v187_v4 = vadd.f32 %v186_v52, %v183_v51 }
  0x3d   :  { %v206_v49 = vadd.f32 %v205_v36, %v202_v40  ;;  %s946_s10 = sld [smem:[#allocation6 + $0x2b]]  ;;  %v217_v57 = vmul.f32 %v216_v46, %v864_v31  ;;  %v220_v60 = vstv %s920_s3 }
  0x3e   :  { %s949_s26 = sld [smem:[#allocation6 + $0x2c]]  ;;  %v221_v10 = vmul.f32 %v220_v60, %v873_v39 }
  0x3f   :  { %v210_v55 = vadd.f32 %v209_v41, %v206_v49  ;;  %s953_s7 = sld [smem:[#allocation6 + $0x2d]]  ;;  %v228_v36 = vstv %s928_s5 }
  0x40   :  { %v232_v61 = vstv %s932_s6  ;;  %s958_s11 = sld [smem:[#allocation6 + $0x2e]] }
  0x41   :  { %v214_v63 = vadd.f32 %v213_v50, %v210_v55  ;;  %v233_v2 = vmul.f32 %v232_v61, %v817_v0  ;;  %v235_v3 = vstv %s937_s8  ;;  %s962_s12 = sld [smem:[#allocation6 + $0x2f]]  ;;  %v224_v0 = vstv %s924_s4 }
  0x42   :  { %v236_v7 = vmul.f32 %v235_v3, %v819_v1  ;;  %v239_v8 = vstv %s942_s9  ;;  %s967_s13 = sld [smem:[#allocation6 + $0x35]]  ;;  %v979_v1 = vmax.f32 %v89_v53, 0.0  ;;  %v225_v23 = vmul.f32 %v224_v0, %v895_v56 }
  0x43   :  { %v218_v9 = vadd.f32 %v217_v57, %v214_v63  ;;  %v240_v11 = vmul.f32 %v239_v8, %v829_v6  ;;  %v243_v13 = vstv %s946_s10  ;;  %s972_s14 = sld [smem:[#allocation6 + $0x36]]  ;;  %v984_v6 = vmax.f32 %v124_v58, 0.0 }
  0x44   :  { %v237_v14 = vadd.f32 %v236_v7, %v233_v2  ;;  %v244_v15 = vmul.f32 %v243_v13, %v838_v12  ;;  %v247_v16 = vstv %s949_s26  ;;  %s977_s15 = sld [smem:[#allocation6 + $0x37]]  ;;  %v191_v12 = vadd.f32 %v190_v5, %v187_v4 }
  0x45   :  { %v251_v17 = vstv %s953_s7  ;;  %s982_s16 = sld [smem:[#allocation6 + $0x38]]  ;;  %v248_v21 = vmul.f32 %v247_v16, %v848_v19  ;;  %v222_v22 = vadd.f32 %v221_v10, %v218_v9 }
  0x46   :  { %v241_v20 = vadd.f32 %v240_v11, %v237_v14  ;;  %s987_s17 = sld [smem:[#allocation6 + $0x39]]  ;;  %v255_v24 = vstv %s958_s11  ;;  %v252_v27 = vmul.f32 %v251_v17, %v864_v31  ;;  %v194_v34 = vadd.f32 %v193_v25, %v191_v12 }
  0x47   :  { %s991_s18 = sld [smem:[#allocation6 + $0x3a]]  ;;  %v259_v28 = vstv %s962_s12  ;;  %v256_v32 = vmul.f32 %v255_v24, %v873_v39  ;;  %v226_v35 = vadd.f32 %v225_v23, %v222_v22 }
  0x48   :  { %v245_v26 = vadd.f32 %v244_v15, %v241_v20  ;;  %s996_s19 = sld [smem:[#allocation6 + $0x3b]]  ;;  %v260_v37 = vmul.f32 %v259_v28, %v895_v56  ;;  %v1012_v39 = vmax.f32 %v194_v34, 0.0  ;;  %v263_v48 = vstv %s967_s13 }
  0x49   :  { %v267_v19 = vstv %s972_s14  ;;  %s999_s0 = sld [smem:[#allocation6 + $0x54]]  ;;  %v229_v43 = vadd.f32 %v228_v36, %v226_v35 }
  0x4a   :  { %v249_v30 = vadd.f32 %v248_v21, %v245_v26  ;;  %v270_v33 = vstv %s977_s15  ;;  %s639_s20 = sld [smem:[#allocation6 + $0x3c]]  ;;  %v268_v38 = vmul.f32 %v267_v19, %v979_v1 }
  0x4b   :  { %s640_s21 = sld [smem:[#allocation6 + $0x3d]]  ;;  %v271_v40 = vmul.f32 %v270_v33, %v984_v6  ;;  %v274_v41 = vstv %s982_s16  ;;  %v1023_v53 = vmax.f32 %v229_v43, 0.0 }
  0x4c   :  { %v253_v31 = vadd.f32 %v252_v27, %v249_v30  ;;  %s641_s22 = sld [smem:[#allocation6 + $0x3e]]  ;;  %v275_v44 = vmul.f32 %v274_v41, %v1001_v29  ;;  %v278_v46 = vstv %s987_s17 }
  0x4d   :  { %s642_s23 = sld [smem:[#allocation6 + $0x3f]]  ;;  %v272_v45 = vadd.f32 %v271_v40, %v268_v38  ;;  %v279_v54 = vmul.f32 %v278_v46, %v1012_v39  ;;  %v282_v60 = vstv %s991_s18 }
  0x4e   :  { %v257_v42 = vadd.f32 %v256_v32, %v253_v31  ;;  %s1010_s24 = sld [smem:[#allocation6 + $0x40]]  ;;  %v283_v3 = vmul.f32 %v282_v60, %v1023_v53  ;;  %v286_v4 = vstv %s996_s19 }
  0x4f   :  { %s1015_s1 = sld [smem:[#allocation6 + $0x41]]  ;;  %v276_v59 = vadd.f32 %v275_v44, %v272_v45  ;;  %v290_v35 = vstv %s999_s0 }
  0x50   :  { %v261_v56 = vadd.f32 %v260_v37, %v257_v42  ;;  %v294_v47 = vstv %s639_s20  ;;  %s1018_s25 = sld [smem:[#allocation6 + $0x55]] }
  0x51   :  { %v295_v49 = vmul.f32 %v294_v47, %v979_v1  ;;  %v297_v50 = vstv %s640_s21  ;;  %s646_s27 = sld [smem:[#allocation6 + $0x42]]  ;;  %v280_v8 = vadd.f32 %v279_v54, %v276_v59 }
  0x52   :  { %v298_v51 = vmul.f32 %v297_v50, %v984_v6  ;;  %v301_v52 = vstv %s641_s22  ;;  %s647_s28 = sld [smem:[#allocation6 + $0x43]]  ;;  %v264_v58 = vadd.f32 %v263_v48, %v261_v56 }
  0x53   :  { %v302_v55 = vmul.f32 %v301_v52, %v1001_v29  ;;  %v305_v57 = vstv %s642_s23  ;;  %s648_s29 = sld [smem:[#allocation6 + $0x44]]  ;;  %v284_v12 = vadd.f32 %v283_v3, %v280_v8 }
  0x54   :  { %v299_v61 = vadd.f32 %v298_v51, %v295_v49  ;;  %s649_s30 = sld [smem:[#allocation6 + $0x45]]  ;;  %v306_v62 = vmul.f32 %v305_v57, %v1012_v39  ;;  %v309_v2 = vstv %s1010_s24  ;;  %v1038_v7 = vmax.f32 %v264_v58, 0.0 }
  0x55   :  { %s1029_s3 = sld [smem:[#allocation6 + $0x46]]  ;;  %v310_v13 = vmul.f32 %v309_v2, %v1023_v53  ;;  %v313_v15 = vstv %s1015_s1 }
  0x56   :  { %v303_v63 = vadd.f32 %v302_v55, %v299_v61  ;;  %s1032_s4 = sld [smem:[#allocation6 + $0x47]]  ;;  %v287_v22 = vmul.f32 %v286_v4, %v1038_v7  ;;  %v314_v25 = vmul.f32 %v313_v15, %v1038_v7  ;;  %v317_v42 = vstv %s1018_s25 }
  0x57   :  { %v321_v5 = vstv %s646_s27  ;;  %s1036_s5 = sld [smem:[#allocation6 + $0x56]] }
  0x58   :  { %v322_v9 = vmul.f32 %v321_v5, %v979_v1  ;;  %v324_v10 = vstv %s647_s28  ;;  %s653_s6 = sld [smem:[#allocation6 + $0x48]]  ;;  %v307_v11 = vadd.f32 %v306_v62, %v303_v63  ;;  %v288_v34 = vadd.f32 %v287_v22, %v284_v12 }
  0x59   :  { %v325_v0 = vmul.f32 %v324_v10, %v984_v6  ;;  %v328_v14 = vstv %s648_s29  ;;  %s654_s8 = sld [smem:[#allocation6 + $0x49]] }
  0x5a   :  { %v329_v16 = vmul.f32 %v328_v14, %v1001_v29  ;;  %v332_v17 = vstv %s649_s30  ;;  %s655_s9 = sld [smem:[#allocation6 + $0x4a]]  ;;  %v311_v24 = vadd.f32 %v310_v13, %v307_v11  ;;  %v291_v47 = vadd.f32 %v290_v35, %v288_v34 }
  0x5b   :  { %v326_v18 = vadd.f32 %v325_v0, %v322_v9  ;;  %v333_v20 = vmul.f32 %v332_v17, %v1012_v39  ;;  %v336_v21 = vstv %s1029_s3  ;;  %s656_s10 = sld [smem:[#allocation6 + $0x4b]] }
  0x5c   :  { %v340_v23 = vstv %s1032_s4  ;;  %s1049_s26 = sld [smem:[#allocation6 + $0x4c]]  ;;  %v337_v27 = vmul.f32 %v336_v21, %v1023_v53  ;;  %v315_v31 = vadd.f32 %v314_v25, %v311_v24  ;;  %v1077_v62 = vmax.f32 %v291_v47, 0.0 }
  0x5d   :  { %v330_v26 = vadd.f32 %v329_v16, %v326_v18  ;;  %s1053_s7 = sld [smem:[#allocation6 + $0x4d]]  ;;  %v341_v30 = vmul.f32 %v340_v23, %v1038_v7  ;;  %v344_v48 = vstv %s1036_s5 }
  0x5e   :  { %v348_v28 = vstv %s653_s6  ;;  %s1055_s11 = sld [smem:[#allocation6 + $0x57]]  ;;  %v318_v51 = vadd.f32 %v317_v42, %v315_v31 }
  0x5f   :  { %v334_v19 = vadd.f32 %v333_v20, %v330_v26  ;;  %v349_v32 = vmul.f32 %v348_v28, %v979_v1  ;;  %v351_v33 = vstv %s654_s8  ;;  %s660_s12 = sld [smem:[#allocation6 + $0x4e]] }
  0x60   :  { %v352_v36 = vmul.f32 %v351_v33, %v984_v6  ;;  %v355_v37 = vstv %s655_s9  ;;  %s661_s13 = sld [smem:[#allocation6 + $0x4f]]  ;;  %v1083_v9 = vmax.f32 %v318_v51, 0.0 }
  0x61   :  { %v338_v38 = vadd.f32 %v337_v27, %v334_v19  ;;  %v356_v40 = vmul.f32 %v355_v37, %v1001_v29  ;;  %v359_v41 = vstv %s656_s10  ;;  %s662_s14 = sld [smem:[#allocation6 + $0x50]] }
  0x62   :  { %v353_v43 = vadd.f32 %v352_v36, %v349_v32  ;;  %v360_v44 = vmul.f32 %v359_v41, %v1012_v39  ;;  %v363_v56 = vstv %s1049_s26  ;;  %s663_s15 = sld [smem:[#allocation6 + $0x51]] }
  0x63   :  { %v342_v45 = vadd.f32 %v341_v30, %v338_v38  ;;  %v367_v46 = vstv %s1053_s7  ;;  %s1066_s16 = sld [smem:[#allocation6 + $0x52]]  ;;  %v364_v50 = vmul.f32 %v363_v56, %v1023_v53 }
  0x64   :  { %v357_v49 = vadd.f32 %v356_v40, %v353_v43  ;;  %s1070_s17 = sld [smem:[#allocation6 + $0x53]]  ;;  %v368_v55 = vmul.f32 %v367_v46, %v1038_v7  ;;  %v371_v4 = vstv %s1055_s11 }
  0x65   :  { %v375_v52 = vstv %s660_s12  ;;  %s1072_s18 = sld [smem:[#allocation6 + $0x58]]  ;;  %v345_v59 = vadd.f32 %v344_v48, %v342_v45 }
  0x66   :  { %v361_v54 = vadd.f32 %v360_v44, %v357_v49  ;;  %v376_v57 = vmul.f32 %v375_v52, %v979_v1  ;;  %v378_v58 = vstv %s661_s13  ;;  %s667_s19 = sld [smem:[#allocation6 + $0x59]] }
  0x67   :  { %v379_v60 = vmul.f32 %v378_v58, %v984_v6  ;;  %v382_v61 = vstv %s662_s14  ;;  %s668_s0 = sld [smem:[#allocation6 + $0x5a]]  ;;  %v1088_v6 = vmax.f32 %v345_v59, 0.0 }
  0x68   :  { %v365_v63 = vadd.f32 %v364_v50, %v361_v54  ;;  %v383_v2 = vmul.f32 %v382_v61, %v1001_v29  ;;  %v386_v3 = vstv %s663_s15  ;;  %s669_s20 = sld [smem:[#allocation6 + $0x5b]] }
  0x69   :  { %v380_v5 = vadd.f32 %v379_v60, %v376_v57  ;;  %v387_v8 = vmul.f32 %v386_v3, %v1012_v39  ;;  %v390_v1 = vstv %s1066_s16  ;;  %s670_s21 = sld [smem:[#allocation6 + $0x5c]] }
  0x6a   :  { %v369_v10 = vadd.f32 %v368_v55, %v365_v63  ;;  %v394_v11 = vstv %s1070_s17  ;;  %s1086_s22 = sld [smem:[#allocation6 + $0x5d]]  ;;  %v391_v0 = vmul.f32 %v390_v1, %v1023_v53 }
  0x6b   :  { %v384_v13 = vadd.f32 %v383_v2, %v380_v5  ;;  %s1091_s23 = sld [smem:[#allocation6 + $0x6d]]  ;;  %v395_v15 = vmul.f32 %v394_v11, %v1038_v7  ;;  %v398_v23 = vstv %s1072_s18 }
  0x6c   :  { %v372_v29 = vadd.f32 %v371_v4, %v369_v10  ;;  %v402_v14 = vstv %s667_s19  ;;  %s673_s24 = sld [smem:[#allocation6 + $0x5e]] }
  0x6d   :  { %v388_v39 = vadd.f32 %v387_v8, %v384_v13  ;;  %v403_v16 = vmul.f32 %v402_v14, %v1077_v62  ;;  %v405_v17 = vstv %s668_s0  ;;  %s674_s1 = sld [smem:[#allocation6 + $0x5f]] }
  0x6e   :  { %v1095_v18 = vmax.f32 %v372_v29, 0.0  ;;  %v406_v20 = vmul.f32 %v405_v17, %v1083_v9  ;;  %v409_v21 = vstv %s669_s20  ;;  %s675_s25 = sld [smem:[#allocation6 + $0x60]] }
  0x6f   :  { %v392_v53 = vadd.f32 %v391_v0, %v388_v39  ;;  %v410_v12 = vmul.f32 %v409_v21, %v1088_v6  ;;  %v413_v22 = vstv %s670_s21  ;;  %s676_s27 = sld [smem:[#allocation6 + $0x61]] }
  0x70   :  { %v407_v24 = vadd.f32 %v406_v20, %v403_v16  ;;  %s677_s28 = sld [smem:[#allocation6 + $0x62]]  ;;  %v414_v25 = vmul.f32 %v413_v22, %v1095_v18  ;;  %v417_v32 = vstv %s1086_s22 }
  0x71   :  { %v396_v7 = vadd.f32 %v395_v15, %v392_v53  ;;  %s1101_s29 = sld [smem:[#allocation6 + $0x6e]]  ;;  %v421_v43 = vstv %s1091_s23 }
  0x72   :  { %v411_v26 = vadd.f32 %v410_v12, %v407_v24  ;;  %v425_v27 = vstv %s673_s24  ;;  %s679_s30 = sld [smem:[#allocation6 + $0x63]] }
  0x73   :  { %v399_v28 = vadd.f32 %v398_v23, %v396_v7  ;;  %v426_v19 = vmul.f32 %v425_v27, %v1077_v62  ;;  %v428_v30 = vstv %s674_s1  ;;  %s680_s3 = sld [smem:[#allocation6 + $0x64]]  ;;  %s783_s1 = smov [#allocation7]  }
  0x74   :  { %v429_v33 = vmul.f32 %v428_v30, %v1083_v9  ;;  %v432_v34 = vstv %s675_s25  ;;  %s681_s4 = sld [smem:[#allocation6 + $0x65]]  ;;  %v415_v36 = vadd.f32 %v414_v25, %v411_v26  ;;  %s566_s25 = sshll.u32 %s783_s1, 4  ;;  %s567_s25 = int_to_ptr.vmem [resolvable:$true] %s566_s25 }
  0x75   :  { %v400_v35 = vmax.f32 %v399_v28, 0.0  ;;  %v433_v37 = vmul.f32 %v432_v34, %v1088_v6  ;;  %v436_v31 = vstv %s676_s27  ;;  %s682_s5 = sld [smem:[#allocation6 + $0x66]] }
  0x76   :  { %v430_v38 = vadd.f32 %v429_v33, %v426_v19  ;;  %v437_v40 = vmul.f32 %v436_v31, %v1095_v18  ;;  %v440_v41 = vstv %s677_s28  ;;  %s683_s6 = sld [smem:[#allocation6 + $0x67]] }
  0x77   :  { %v418_v42 = vmul.f32 %v417_v32, %v400_v35  ;;  %s1108_s8 = sld [smem:[#allocation6 + $0x6f]]  ;;  %v441_v56 = vmul.f32 %v440_v41, %v400_v35  ;;  %v444_v54 = vstv %s1101_s29  ;;  %s568_s29 = sshll.u32 %s1132_s2, 4  ;;  %s569_s29 = int_to_ptr.hbm [resolvable:$true] %s568_s29 }
  0x78   :  { %v434_v44 = vadd.f32 %v433_v37, %v430_v38  ;;  %v448_v45 = vstv %s679_s30  ;;  %s685_s9 = sld [smem:[#allocation6 + $0x68]] }
  0x79   :  { %v419_v46 = vadd.f32 %v418_v42, %v415_v36  ;;  %v449_v47 = vmul.f32 %v448_v45, %v1077_v62  ;;  %v451_v48 = vstv %s680_s3  ;;  %s686_s10 = sld [smem:[#allocation6 + $0x69]] }
  0x7a   :  { %v438_v49 = vadd.f32 %v437_v40, %v434_v44  ;;  %v452_v50 = vmul.f32 %v451_v48, %v1083_v9  ;;  %v455_v51 = vstv %s681_s4  ;;  %s687_s26 = sld [smem:[#allocation6 + $0x6a]] }
  0x7b   :  { %v422_v52 = vadd.f32 %v421_v43, %v419_v46  ;;  %v456_v55 = vmul.f32 %v455_v51, %v1088_v6  ;;  %v459_v57 = vstv %s682_s5  ;;  %s688_s7 = sld [smem:[#allocation6 + $0x6b]] }
  0x7c   :  { %v442_v58 = vadd.f32 %v441_v56, %v438_v49  ;;  %v453_v59 = vadd.f32 %v452_v50, %v449_v47  ;;  %v460_v60 = vmul.f32 %v459_v57, %v1095_v18  ;;  %v463_v61 = vstv %s683_s6  ;;  %s689_s11 = sld [smem:[#allocation6 + $0x6c]] }
  0x7d   :  { %s1116_s12 = sld [smem:[#allocation6 + $0x70]]  ;;  %v464_v3 = vmul.f32 %v463_v61, %v400_v35  ;;  %v423_v1 = vmax.f32 %v422_v52, 0.0  ;;  %v467_v29 = vstv %s1108_s8 }
  0x7e   :  { %v445_v63 = vadd.f32 %v444_v54, %v442_v58  ;;  %v457_v2 = vadd.f32 %v456_v55, %v453_v59  ;;  %v471_v4 = vstv %s685_s9  ;;  %s691_s13 = sld [smem:[#allocation6 + $0x71]] }
  0x7f   :  { %v472_v5 = vmul.f32 %v471_v4, %v1077_v62  ;;  %v474_v8 = vstv %s686_s10  ;;  %s692_s14 = sld [smem:[#allocation6 + $0x72]] }
  0x80   :  { %v461_v10 = vadd.f32 %v460_v60, %v457_v2  ;;  %v475_v11 = vmul.f32 %v474_v8, %v1083_v9  ;;  %v478_v13 = vstv %s687_s26  ;;  %s693_s15 = sld [smem:[#allocation6 + $0x73]]  ;;  %v446_v0 = vmax.f32 %v445_v63, 0.0 }
  0x81   :  { %v479_v14 = vmul.f32 %v478_v13, %v1088_v6  ;;  %v482_v39 = vstv %s688_s7  ;;  %s1123_s16 = sld [smem:[#allocation6 + $0x74]] }
  0x82   :  { %v465_v15 = vadd.f32 %v464_v3, %v461_v10  ;;  %v476_v16 = vadd.f32 %v475_v11, %v472_v5  ;;  %v483_v17 = vmul.f32 %v482_v39, %v1095_v18  ;;  %v486_v20 = vstv %s689_s11  ;;  %s696_s17 = sld [smem:[#allocation6 + $0x75]] }
  0x83   :  { %v487_v53 = vmul.f32 %v486_v20, %v400_v35  ;;  %s697_s18 = sld [smem:[#allocation6 + $0x76]]  ;;  %v490_v18 = vstv %s1116_s12 }
  0x84   :  { %v468_v62 = vadd.f32 %v467_v29, %v465_v15  ;;  %v480_v21 = vadd.f32 %v479_v14, %v476_v16  ;;  %v494_v9 = vstv %s691_s13  ;;  %s698_s19 = sld [smem:[#allocation6 + $0x77]] }
  0x85   :  { %v495_v12 = vmul.f32 %v494_v9, %v423_v1  ;;  %v497_v22 = vstv %s692_s14  ;;  %s699_s0 = sld [smem:[#allocation6 + $0x78]] }
  0x86   :  { %v469_v6 = vmax.f32 %v468_v62, 0.0  ;;  %v484_v23 = vadd.f32 %v483_v17, %v480_v21  ;;  %v498_v24 = vmul.f32 %v497_v22, %v446_v0  ;;  %v501_v7 = vstv %s693_s15  ;;  %s695_s20 = sld [smem:[#allocation6 + $0x79]] }
  0x87   :  { %s700_s21 = sld [smem:[#allocation6 + $0x7a]]  ;;  %v505_v33 = vstv %s1123_s16 }
  0x88   :  { %v488_v25 = vadd.f32 %v487_v53, %v484_v23  ;;  %v499_v26 = vadd.f32 %v498_v24, %v495_v12  ;;  %v502_v27 = vmul.f32 %v501_v7, %v469_v6  ;;  %v513_v28 = vstv %s696_s17  ;;  %s701_s22 = sld [smem:[#allocation6 + $0x7b]] }
  0x89   :  { %v514_v30 = vmul.f32 %v513_v28, %v423_v1  ;;  %v516_v32 = vstv %s697_s18  ;;  %s702_s23 = sld [smem:[#allocation6 + $0x7c]] }
  0x8a   :  { %v491_v19 = vadd.f32 %v490_v18, %v488_v25  ;;  %v517_v34 = vmul.f32 %v516_v32, %v446_v0  ;;  %v520_v35 = vstv %s698_s19  ;;  %v503_v37 = vadd.f32 %v502_v27, %v499_v26  ;;  %s703_s24 = sld [smem:[#allocation6 + $0x7d]] }
  0x8b   :  { %v521_v31 = vmul.f32 %v520_v35, %v469_v6  ;;  %v524_v38 = vstv %s699_s0 }
  0x8c   :  { %v492_v36 = vmax.f32 %v491_v19, 0.0  ;;  %v518_v40 = vadd.f32 %v517_v34, %v514_v30  ;;  %v509_v43 = vstv %s695_s20 }
  0x8d   :  { %v528_v45 = vstv %s700_s21 }
  0x8e   :  { %v506_v41 = vmul.f32 %v505_v33, %v492_v36  ;;  %v525_v42 = vmul.f32 %v524_v38, %v492_v36  ;;  %v522_v44 = vadd.f32 %v521_v31, %v518_v40  ;;  %v532_v49 = vstv %s701_s22 }
  0x8f   :  { %v535_v51 = vstv %s702_s23 }
  0x90   :  { %v507_v56 = vadd.f32 %v506_v41, %v503_v37  ;;  %v526_v46 = vadd.f32 %v525_v42, %v522_v44  ;;  %v539_v57 = vstv %s703_s24 }
  0x92   :  { %v510_v47 = vadd.f32 %v509_v43, %v507_v56  ;;  %v529_v48 = vadd.f32 %v528_v45, %v526_v46 }
  0x94   :  { %v511_v50 = vmax.f32 %v510_v47, 0.0  ;;  %v530_v52 = vmax.f32 %v529_v48, 0.0 }
  0x96   :  { %v533_v54 = vmul.f32 %v532_v49, %v511_v50  ;;  %v536_v55 = vmul.f32 %v535_v51, %v530_v52 }
  0x98   :  { %v537_v58 = vadd.f32 %v536_v55, %v533_v54 }
  0x9a   :  { %v540_v59 = vadd.f32 %v539_v57, %v537_v58 }
  0x9c   :  { %v541_v60 = vsub.f32 0.0, %v540_v59 }
  0x9e   :  { %v542_v61 = vmul.f32 1.442695, %v541_v60 }
  0xa0   :  { %709 = vpow2.f32 %v542_v61 }
  0xa6   :  { %v710_v63 = vpop.eup %709 }
  0xa7   :  { %v544_v2 = vadd.f32 1.0, %v710_v63 }
  0xa9   :  { %711 = vrcp.f32 %v544_v2  ;;  %v556_v5 = vand.u32 2147483648, %v544_v2  ;;  %vm550_vm0 = vweird.f32 %v544_v2  ;;  %v554_v1 = vand.u32 2147483647, %v544_v2 }
  0xab   :  { %v557_v11 = vor.u32 1.1754944e-38, %v556_v5  ;;  %vm555_vm3 = vcmp.eq.f32.partialorder %v554_v1, 8.507059e+37 }
  0xaf   :  { %v712_v3 = vpop.eup %711 }
  0xb0   :  { %v546_v4 = vmul.f32 %v712_v3, %v544_v2  ;;  %vm551_vm1 = vweird.f32 %v712_v3 }
  0xb1   :  { %vm552_vm2 = vmor %vm550_vm0, %vm551_vm1 }
  0xb2   :  { %v547_v8 = vsub.f32 1.0, %v546_v4 }
  0xb4   :  { %v548_v10 = vmul.f32 %v712_v3, %v547_v8 }
  0xb6   :  { %v549_v13 = vadd.f32 %v712_v3, %v548_v10 }
  0xb8   :  { %v553_v0 = vsel %vm552_vm2, %v712_v3, %v549_v13 }
  0xb9   :  { %v558_v29 = vsel %vm555_vm3, %v557_v11, %v553_v0 }
  0xba   :  { %560 = vst [vmem:[#allocation7] sm:$0x1] %v558_v29 }
  0xbb   :  { %571 = dma.vmem_to_hbm [thread:$0]  %s567_s25, 16, %s569_s29, [#allocation4]  }
  0xbc   :  { %777 = dma.done.wait [#allocation4], 16  }
  0xbd   :  { %778 = vsyncadd [#allocation4], 4294967280 }
  0xbe   :  { %576 = vsyncpa [#allocation3], 1 }
  0xbf   :  { %577 = vsyncpa [#allocation4], 1 }
  0xc0   :  { %578 = vsyncpa [#allocation5], 1 }

</bundles_post_ra>
